<compile_context>
chip_gen: v7x
topology: tpu7x:2x2x1
jax: 0.10.0
libtpu: 0.0.40
codegen_flags: <defaults>
</compile_context>

<pallas_src>
import jax
import jax.numpy as jnp
from jax.experimental import pallas as pl
from jax.experimental.pallas import tpu as pltpu


def _round_up(n, m):
    return ((n + m - 1) // m) * m


def _leaky_relu(v, slope=0.2):
    # For 0 < slope < 1, max(v, slope*v) == leaky_relu(v): one VPU max
    # per element instead of compare + select.
    return jnp.maximum(v, slope * v)


def generator_kernel(x_ref,
                     w1_ref, b1_ref,
                     w2_ref, b2_ref,
                     w3_ref, b3_ref,
                     w4_ref, b4_ref,
                     o_ref):
    """Fused 4-layer MLP: (Linear + LeakyReLU(0.2)) x3 -> Linear -> tanh."""
    # bf16 operands into the MXU, f32 accumulation, f32 elementwise epilogue.
    h = x_ref[...].astype(jnp.bfloat16)

    h = jnp.dot(h, w1_ref[...], preferred_element_type=jnp.float32) + b1_ref[...]
    h = _leaky_relu(h).astype(jnp.bfloat16)

    h = jnp.dot(h, w2_ref[...], preferred_element_type=jnp.float32) + b2_ref[...]
    h = _leaky_relu(h).astype(jnp.bfloat16)

    h = jnp.dot(h, w3_ref[...], preferred_element_type=jnp.float32) + b3_ref[...]
    h = _leaky_relu(h).astype(jnp.bfloat16)

    h = jnp.dot(h, w4_ref[...], preferred_element_type=jnp.float32) + b4_ref[...]
    o_ref[...] = jnp.tanh(h).astype(o_ref.dtype)


def init_generator_params(key, g_input_dim, g_output_dim):
    """Deterministic init mimicking nn.Linear's U(-1/sqrt(fan_in), ...).

    Weights are returned already transposed ([in, out]) and cast to bf16;
    biases stay f32 with shape [1, out].  fc1's input dim is zero-padded to a
    multiple of 128 (zero rows are a mathematical no-op) for clean lane/MXU
    utilization.
    """
    dims = [g_input_dim, 256, 512, 1024, g_output_dim]
    params = []
    for i in range(4):
        fan_in, fan_out = dims[i], dims[i + 1]
        key, kw, kb = jax.random.split(key, 3)
        bound = 1.0 / float(fan_in) ** 0.5
        w = jax.random.uniform(kw, (fan_in, fan_out), jnp.float32, -bound, bound)
        b = jax.random.uniform(kb, (1, fan_out), jnp.float32, -bound, bound)
        if i == 0:
            pad_in = _round_up(fan_in, 128) - fan_in
            if pad_in:
                w = jnp.pad(w, ((0, pad_in), (0, 0)))
        params.append((w.astype(jnp.bfloat16), b))
    return params


def _pad_features(x, in_dim):
    if x.shape[1] < in_dim:
        x = jnp.pad(x, ((0, 0), (0, in_dim - x.shape[1])))
    return x


def generator_forward(x, params, *, tile_b=512, out_dtype=jnp.bfloat16):
    """Run the fused generator. Tiles the batch; weights stay VMEM-resident."""
    B = x.shape[0]
    in_dim = params[0][0].shape[0]     # already padded to a multiple of 128
    out_dim = params[-1][0].shape[1]
    x = _pad_features(x, in_dim)

    # Batch tile: always a multiple of 8 (sublane), never larger than needed.
    tb = _round_up(min(max(tile_b, 8), B), 8)
    # For larger batches make sure there are >=2 independent tiles so the
    # "parallel" grid axis can shard across v7x's two TensorCores.
    if B >= 256 and pl.cdiv(B, tb) < 2:
        tb = _round_up(pl.cdiv(B, 2), 8)
    padded_b = _round_up(B, tb)
    if padded_b != B:
        x = jnp.pad(x, ((0, padded_b - B), (0, 0)))
    num_tiles = padded_b // tb

    flat_args = [x]
    for w, b in params:
        flat_args.extend([w, b])

    in_specs = [pl.BlockSpec((tb, in_dim), lambda i: (i, 0))]
    for w, b in params:
        # Constant index_map: weights/biases are DMA'd once and remain
        # resident in VMEM across all batch-tile grid steps.  (Double
        # buffering these constant blocks costs ~1.85 MiB - well within the
        # 32 MiB scoped-VMEM budget on every generation.)
        in_specs.append(pl.BlockSpec(w.shape, lambda i: (0, 0)))
        in_specs.append(pl.BlockSpec(b.shape, lambda i: (0, 0)))
    out_spec = pl.BlockSpec((tb, out_dim), lambda i: (i, 0))

    # Advisory cost estimate so XLA schedules/overlaps the custom call well.
    flops = 2 * padded_b * sum(w.shape[0] * w.shape[1] for w, _ in params)
    weight_bytes = sum(w.size * w.dtype.itemsize + b.size * b.dtype.itemsize
                       for w, b in params)
    bytes_accessed = (weight_bytes
                      + x.size * x.dtype.itemsize
                      + padded_b * out_dim * jnp.dtype(out_dtype).itemsize)
    cost = pl.CostEstimate(flops=flops,
                           transcendentals=padded_b * out_dim,
                           bytes_accessed=bytes_accessed)

    out = pl.pallas_call(
        generator_kernel,
        out_shape=jax.ShapeDtypeStruct((padded_b, out_dim), out_dtype),
        grid=(num_tiles,),
        in_specs=in_specs,
        out_specs=out_spec,
        compiler_params=pltpu.CompilerParams(
            # Batch tiles are independent -> megacore-shard when >1 tile.
            dimension_semantics=(("parallel",) if num_tiles > 1
                                 else ("arbitrary",)),
            # ~10 MiB peak at tb=512 (f32 intermediates + double-buffered IO);
            # 32 MiB is safe on v5e/v6e (128 MiB) and v7x (64 MiB) alike.
            vmem_limit_bytes=32 << 20,
        ),
        cost_estimate=cost,
    )(*flat_args)

    return out[:B] if padded_b != B else out


def generator_forward_ref(x, params, out_dtype=jnp.bfloat16):
    """Pure-JAX reference with the same bf16-matmul / f32-epilogue precision."""
    h = _pad_features(x, params[0][0].shape[0])
    for i, (w, b) in enumerate(params):
        h = jnp.dot(h.astype(jnp.bfloat16), w,
                    preferred_element_type=jnp.float32) + b
        if i < 3:
            h = jnp.maximum(h, 0.2 * h)
        else:
            h = jnp.tanh(h)
    return h.astype(out_dtype)


if __name__ == "__main__":
    # Small shapes consistent with the module's forward:
    # latent z of dim 64, output image vector of dim 256, batch 8.
    B, G_INPUT_DIM, G_OUTPUT_DIM = 8, 64, 256

    key = jax.random.PRNGKey(0)
    key, kx = jax.random.split(key)
    x = jax.random.normal(kx, (B, G_INPUT_DIM), jnp.float32)

    params = init_generator_params(key, G_INPUT_DIM, G_OUTPUT_DIM)

    out = jax.block_until_ready(generator_forward(x, params))
    ref = generator_forward_ref(x, params)

    assert out.shape == (B, G_OUTPUT_DIM), out.shape
    err = jnp.max(jnp.abs(out.astype(jnp.float32) - ref.astype(jnp.float32)))
    assert jnp.allclose(out.astype(jnp.float32), ref.astype(jnp.float32),
                        atol=2e-2, rtol=2e-2), float(err)

    print("KERNEL_OK")
</pallas_src>

<mosaic_0001>
module attributes {stable_mosaic.version = 11 : i64} {
  func.func @generator_kernel(%arg0: i32, %arg1: memref<8x128xf32, #tpu.memory_space<vmem>>, %arg2: memref<128x256xbf16, #tpu.memory_space<vmem>>, %arg3: memref<1x256xf32, #tpu.memory_space<vmem>>, %arg4: memref<256x512xbf16, #tpu.memory_space<vmem>>, %arg5: memref<1x512xf32, #tpu.memory_space<vmem>>, %arg6: memref<512x1024xbf16, #tpu.memory_space<vmem>>, %arg7: memref<1x1024xf32, #tpu.memory_space<vmem>>, %arg8: memref<1024x256xbf16, #tpu.memory_space<vmem>>, %arg9: memref<1x256xf32, #tpu.memory_space<vmem>>, %arg10: memref<8x256xbf16, #tpu.memory_space<vmem>>) attributes {dimension_semantics = [#tpu.dimension_semantics<arbitrary>], iteration_bounds = array<i64: 1>, scalar_prefetch = 0 : i64, scratch_operands = 0 : i64, tpu.core_type = #tpu.core_type<tc>, window_params = [{transform_indices = @transform_0, window_bounds = array<i64: 8, 128>}, {pipeline_mode = #tpu.pipeline_mode<synchronous>, transform_indices = @transform_1, window_bounds = array<i64: 128, 256>}, {pipeline_mode = #tpu.pipeline_mode<synchronous>, transform_indices = @transform_2, window_bounds = array<i64: 1, 256>}, {pipeline_mode = #tpu.pipeline_mode<synchronous>, transform_indices = @transform_3, window_bounds = array<i64: 256, 512>}, {pipeline_mode = #tpu.pipeline_mode<synchronous>, transform_indices = @transform_4, window_bounds = array<i64: 1, 512>}, {pipeline_mode = #tpu.pipeline_mode<synchronous>, transform_indices = @transform_5, window_bounds = array<i64: 512, 1024>}, {pipeline_mode = #tpu.pipeline_mode<synchronous>, transform_indices = @transform_6, window_bounds = array<i64: 1, 1024>}, {pipeline_mode = #tpu.pipeline_mode<synchronous>, transform_indices = @transform_7, window_bounds = array<i64: 1024, 256>}, {pipeline_mode = #tpu.pipeline_mode<synchronous>, transform_indices = @transform_8, window_bounds = array<i64: 1, 256>}, {transform_indices = @transform_9, window_bounds = array<i64: 8, 256>}]} {
    %c0 = arith.constant 0 : index
    %c0_0 = arith.constant 0 : index
    %0 = vector.load %arg1[%c0, %c0_0] : memref<8x128xf32, #tpu.memory_space<vmem>>, vector<8x128xf32>
    %1 = arith.truncf %0 : vector<8x128xf32> to vector<8x128xbf16>
    %c0_1 = arith.constant 0 : index
    %c0_2 = arith.constant 0 : index
    %2 = vector.load %arg2[%c0_1, %c0_2] : memref<128x256xbf16, #tpu.memory_space<vmem>>, vector<128x256xbf16>
    %cst = arith.constant dense<0.000000e+00> : vector<8x256xf32>
    %3 = tpu.matmul %1, %2, %cst {dimension_numbers = #tpu.dot_dimension_numbers<[1], [0], [0], [1], [0, 0, 1, 1], [], []>} : vector<8x128xbf16>, vector<128x256xbf16>, vector<8x256xf32> -> vector<8x256xf32>
    %c0_3 = arith.constant 0 : index
    %c0_4 = arith.constant 0 : index
    %4 = vector.load %arg3[%c0_3, %c0_4] : memref<1x256xf32, #tpu.memory_space<vmem>>, vector<1x256xf32>
    %5 = vector.broadcast %4 : vector<1x256xf32> to vector<8x256xf32>
    %6 = arith.addf %3, %5 : vector<8x256xf32>
    %cst_5 = arith.constant 2.000000e-01 : f32
    %7 = vector.broadcast %cst_5 : f32 to vector<8x256xf32>
    %8 = arith.mulf %7, %6 : vector<8x256xf32>
    %9 = arith.maximumf %6, %8 : vector<8x256xf32>
    %10 = arith.truncf %9 : vector<8x256xf32> to vector<8x256xbf16>
    %c0_6 = arith.constant 0 : index
    %c0_7 = arith.constant 0 : index
    %11 = vector.load %arg4[%c0_6, %c0_7] : memref<256x512xbf16, #tpu.memory_space<vmem>>, vector<256x512xbf16>
    %cst_8 = arith.constant dense<0.000000e+00> : vector<8x512xf32>
    %12 = tpu.matmul %10, %11, %cst_8 {dimension_numbers = #tpu.dot_dimension_numbers<[1], [0], [0], [1], [0, 0, 1, 1], [], []>} : vector<8x256xbf16>, vector<256x512xbf16>, vector<8x512xf32> -> vector<8x512xf32>
    %c0_9 = arith.constant 0 : index
    %c0_10 = arith.constant 0 : index
    %13 = vector.load %arg5[%c0_9, %c0_10] : memref<1x512xf32, #tpu.memory_space<vmem>>, vector<1x512xf32>
    %14 = vector.broadcast %13 : vector<1x512xf32> to vector<8x512xf32>
    %15 = arith.addf %12, %14 : vector<8x512xf32>
    %cst_11 = arith.constant 2.000000e-01 : f32
    %16 = vector.broadcast %cst_11 : f32 to vector<8x512xf32>
    %17 = arith.mulf %16, %15 : vector<8x512xf32>
    %18 = arith.maximumf %15, %17 : vector<8x512xf32>
    %19 = arith.truncf %18 : vector<8x512xf32> to vector<8x512xbf16>
    %c0_12 = arith.constant 0 : index
    %c0_13 = arith.constant 0 : index
    %20 = vector.load %arg6[%c0_12, %c0_13] : memref<512x1024xbf16, #tpu.memory_space<vmem>>, vector<512x1024xbf16>
    %cst_14 = arith.constant dense<0.000000e+00> : vector<8x1024xf32>
    %21 = tpu.matmul %19, %20, %cst_14 {dimension_numbers = #tpu.dot_dimension_numbers<[1], [0], [0], [1], [0, 0, 1, 1], [], []>} : vector<8x512xbf16>, vector<512x1024xbf16>, vector<8x1024xf32> -> vector<8x1024xf32>
    %c0_15 = arith.constant 0 : index
    %c0_16 = arith.constant 0 : index
    %22 = vector.load %arg7[%c0_15, %c0_16] : memref<1x1024xf32, #tpu.memory_space<vmem>>, vector<1x1024xf32>
    %23 = vector.broadcast %22 : vector<1x1024xf32> to vector<8x1024xf32>
    %24 = arith.addf %21, %23 : vector<8x1024xf32>
    %cst_17 = arith.constant 2.000000e-01 : f32
    %25 = vector.broadcast %cst_17 : f32 to vector<8x1024xf32>
    %26 = arith.mulf %25, %24 : vector<8x1024xf32>
    %27 = arith.maximumf %24, %26 : vector<8x1024xf32>
    %28 = arith.truncf %27 : vector<8x1024xf32> to vector<8x1024xbf16>
    %c0_18 = arith.constant 0 : index
    %c0_19 = arith.constant 0 : index
    %29 = vector.load %arg8[%c0_18, %c0_19] : memref<1024x256xbf16, #tpu.memory_space<vmem>>, vector<1024x256xbf16>
    %cst_20 = arith.constant dense<0.000000e+00> : vector<8x256xf32>
    %30 = tpu.matmul %28, %29, %cst_20 {dimension_numbers = #tpu.dot_dimension_numbers<[1], [0], [0], [1], [0, 0, 1, 1], [], []>} : vector<8x1024xbf16>, vector<1024x256xbf16>, vector<8x256xf32> -> vector<8x256xf32>
    %c0_21 = arith.constant 0 : index
    %c0_22 = arith.constant 0 : index
    %31 = vector.load %arg9[%c0_21, %c0_22] : memref<1x256xf32, #tpu.memory_space<vmem>>, vector<1x256xf32>
    %32 = vector.broadcast %31 : vector<1x256xf32> to vector<8x256xf32>
    %33 = arith.addf %30, %32 : vector<8x256xf32>
    %34 = math.tanh %33 : vector<8x256xf32>
    %35 = arith.truncf %34 : vector<8x256xf32> to vector<8x256xbf16>
    %c0_23 = arith.constant 0 : index
    %c0_24 = arith.constant 0 : index
    %36 = vector.load %arg10[%c0_23, %c0_24] : memref<8x256xbf16, #tpu.memory_space<vmem>>, vector<8x256xbf16>
    tpu.vector_store %arg10[%c0_23, %c0_24], %35 {strides = array<i32>} : memref<8x256xbf16, #tpu.memory_space<vmem>>, vector<8x256xbf16>,
    return
  }
  func.func @transform_0(%arg0: i32) -> (i32, i32) {
    %c0_i32 = arith.constant 0 : i32
    %c0_i32_0 = arith.constant 0 : i32
    return %arg0, %c0_i32 : i32, i32
  }
  func.func @transform_1(%arg0: i32) -> (i32, i32) {
    %c0_i32 = arith.constant 0 : i32
    %c0_i32_0 = arith.constant 0 : i32
    %c0_i32_1 = arith.constant 0 : i32
    return %c0_i32, %c0_i32_0 : i32, i32
  }
  func.func @transform_2(%arg0: i32) -> (i32, i32) {
    %c0_i32 = arith.constant 0 : i32
    %c0_i32_0 = arith.constant 0 : i32
    %c0_i32_1 = arith.constant 0 : i32
    return %c0_i32, %c0_i32_0 : i32, i32
  }
  func.func @transform_3(%arg0: i32) -> (i32, i32) {
    %c0_i32 = arith.constant 0 : i32
    %c0_i32_0 = arith.constant 0 : i32
    %c0_i32_1 = arith.constant 0 : i32
    return %c0_i32, %c0_i32_0 : i32, i32
  }
  func.func @transform_4(%arg0: i32) -> (i32, i32) {
    %c0_i32 = arith.constant 0 : i32
    %c0_i32_0 = arith.constant 0 : i32
    %c0_i32_1 = arith.constant 0 : i32
    return %c0_i32, %c0_i32_0 : i32, i32
  }
  func.func @transform_5(%arg0: i32) -> (i32, i32) {
    %c0_i32 = arith.constant 0 : i32
    %c0_i32_0 = arith.constant 0 : i32
    %c0_i32_1 = arith.constant 0 : i32
    return %c0_i32, %c0_i32_0 : i32, i32
  }
  func.func @transform_6(%arg0: i32) -> (i32, i32) {
    %c0_i32 = arith.constant 0 : i32
    %c0_i32_0 = arith.constant 0 : i32
    %c0_i32_1 = arith.constant 0 : i32
    return %c0_i32, %c0_i32_0 : i32, i32
  }
  func.func @transform_7(%arg0: i32) -> (i32, i32) {
    %c0_i32 = arith.constant 0 : i32
    %c0_i32_0 = arith.constant 0 : i32
    %c0_i32_1 = arith.constant 0 : i32
    return %c0_i32, %c0_i32_0 : i32, i32
  }
  func.func @transform_8(%arg0: i32) -> (i32, i32) {
    %c0_i32 = arith.constant 0 : i32
    %c0_i32_0 = arith.constant 0 : i32
    %c0_i32_1 = arith.constant 0 : i32
    return %c0_i32, %c0_i32_0 : i32, i32
  }
  func.func @transform_9(%arg0: i32) -> (i32, i32) {
    %c0_i32 = arith.constant 0 : i32
    %c0_i32_0 = arith.constant 0 : i32
    return %arg0, %c0_i32 : i32, i32
  }
}

</mosaic_0001>

<bundles_post_ra>
// kernel: tpu_custom_call.1
= control target key start
LH: loop header
LB: loop body
LE: loop exit
PB: predicated region body
PF: predicated region fallthrough
CT: control target
= control target key end

     0   :  { %14 = vsyncpa [#allocation3], 0  ;;  %s4892_s0 = inlined_call_operand.hbm [shape: f32[8,128], index: 0, kind: input, shape index: {}]   ;;  %s4893_s1 = inlined_call_operand.hbm [shape: bf16[128,256], index: 1, kind: input, shape index: {}]   ;;  %s4894_s2 = inlined_call_operand.vmem [shape: f32[1,256], index: 2, kind: input, shape index: {}]   ;;  %s4895_s3 = inlined_call_operand.hbm [shape: bf16[256,512], index: 3, kind: input, shape index: {}]   ;;  %s4896_s4 = inlined_call_operand.vmem [shape: f32[1,512], index: 4, kind: input, shape index: {}]   ;;  %s4897_s5 = inlined_call_operand.hbm [shape: bf16[512,1024], index: 5, kind: input, shape index: {}]   ;;  %s4898_s6 = inlined_call_operand.vmem [shape: f32[1,1024], index: 6, kind: input, shape index: {}]   ;;  %s4899_s7 = inlined_call_operand.hbm [shape: bf16[1024,256], index: 7, kind: input, shape index: {}]   ;;  %s4900_s8 = inlined_call_operand.vmem [shape: f32[1,256], index: 8, kind: input, shape index: {}]   ;;  %s4901_s9 = inlined_call_operand.hbm [shape: bf16[8,256], index: 9, kind: output, shape index: {}]  }
   0x1   :  { %15 = vsyncpa [#allocation6], 0 }
   0x2   :  { %16 = vsyncpa [#allocation9], 0 }
   0x3   :  { %17 = vsyncpa [#allocation4], 0  ;;  %s4630_s30 = smov [#allocation5]   ;;  %s4490_s13 = scalar_lea.hbm %s4893_s1, 2048 }
   0x4   :  { %s33_s10 = sshll.u32 %s4630_s30, 4  ;;  %p4491_p0 = scmp.ne.s32.totalorder %s4893_s1, %s4490_s13  ;;  %s34_s10 = int_to_ptr.vmem [resolvable:$true] %s33_s10 }
   0x5   :  { %p4494_p1 = scmp.lt.u32.totalorder %s4490_s13, %s4893_s1 }
   0x7   :  { %p4496_p2 = pnand %p4494_p1, %p4491_p0 }
   0x9   :  { %4499 = shalt.err (!%p4496_p2)
}
   0xa   :  { %s4500_s18 = scalar_lea.vmem %s34_s10, 2048  ;;  %p4505_p4 = scmp.lt.s32.totalorder %s34_s10, %s34_s10 }
   0xb   :  { %p4501_p3 = scmp.ne.s32.totalorder %s34_s10, %s4500_s18  ;;  %p4506_p5 = scmp.lt.s32.totalorder %s4500_s18, %s4500_s18 }
   0xd   :  { %p4507_p6 = por %p4506_p5, %p4505_p4 }
   0xf   :  { %p4508_p7 = pnand %p4507_p6, %p4501_p3 }
  0x11   :  { %4511 = shalt.err (!%p4508_p7)
}
  0x12   :  { %s4631_s19 = smov 128   ;;  %s4632_s20 = smov 8  }
  0x13   :  { %39 = dma.hbm_to_vmem [thread:$0]  %s4893_s1, 2048, %s34_s10, [#allocation6], %s4631_s19, %s4631_s19, %s4632_s20  }
  0x14   :  { %s4633_s23 = smov [#allocation8]   ;;  %s4512_s27 = scalar_lea.hbm %s4897_s5, 32768 }
  0x15   :  { %s61_s24 = sshll.u32 %s4633_s23, 4  ;;  %p4513_p8 = scmp.ne.s32.totalorder %s4897_s5, %s4512_s27  ;;  %s62_s24 = int_to_ptr.vmem [resolvable:$true] %s61_s24 }
  0x16   :  { %p4516_p9 = scmp.lt.u32.totalorder %s4512_s27, %s4897_s5 }
  0x18   :  { %p4518_p10 = pnand %p4516_p9, %p4513_p8 }
  0x1a   :  { %4521 = shalt.err (!%p4518_p10)
}
  0x1b   :  { %s4522_s12 = scalar_lea.vmem %s62_s24, 32768  ;;  %p4527_p12 = scmp.lt.s32.totalorder %s62_s24, %s62_s24 }
  0x1c   :  { %p4523_p11 = scmp.ne.s32.totalorder %s62_s24, %s4522_s12  ;;  %p4528_p13 = scmp.lt.s32.totalorder %s4522_s12, %s4522_s12 }
  0x1e   :  { %p4529_p0 = por %p4528_p13, %p4527_p12 }
  0x20   :  { %p4530_p1 = pnand %p4529_p0, %p4523_p11 }
  0x22   :  { %4533 = shalt.err (!%p4530_p1)
}
  0x23   :  { %s4634_s1 = smov 512   ;;  %s4635_s10 = smov 32  }
  0x24   :  { %67 = dma.hbm_to_vmem [thread:$0]  %s4897_s5, 32768, %s62_s24, [#allocation9], %s4634_s1, %s4634_s1, %s4635_s10  }
  0x25   :  { %s4636_s15 = smov [#allocation2]   ;;  %s4637_s17 = smov [#allocation7]  }
  0x26   :  { %s24_s16 = sshll.u32 %s4636_s15, 4  ;;  %s47_s18 = sshll.u32 %s4637_s17, 4  ;;  %s25_s16 = int_to_ptr.vmem [resolvable:$true] %s24_s16  ;;  %s4720_s18 = int_to_ptr.vmem [resolvable:$true] %s47_s18 }
  0x27   :  { %s4534_s23 = scalar_lea.hbm %s4892_s0, 128 }
  0x28   :  { %p4535_p2 = scmp.ne.s32.totalorder %s4892_s0, %s4534_s23  ;;  %p4538_p3 = scmp.lt.u32.totalorder %s4534_s23, %s4892_s0 }
  0x2a   :  { %p4540_p4 = pnand %p4538_p3, %p4535_p2 }
  0x2c   :  { %4543 = shalt.err (!%p4540_p4)
}
  0x2d   :  { %s4544_s5 = scalar_lea.vmem %s25_s16, 128  ;;  %p4549_p6 = scmp.lt.s32.totalorder %s25_s16, %s25_s16 }
  0x2e   :  { %p4545_p5 = scmp.ne.s32.totalorder %s25_s16, %s4544_s5  ;;  %p4550_p7 = scmp.lt.s32.totalorder %s4544_s5, %s4544_s5 }
  0x30   :  { %p4551_p8 = por %p4550_p7, %p4549_p6 }
  0x32   :  { %p4552_p9 = pnand %p4551_p8, %p4545_p5 }
  0x34   :  { %4555 = shalt.err (!%p4552_p9)
}
  0x35   :  { %27 = dma.hbm_to_vmem [thread:$0]  %s4892_s0, 128, %s25_s16, [#allocation3]  }
  0x36   :  { %s4556_s12 = scalar_lea.hbm %s4895_s3, 8192 }
  0x37   :  { %p4557_p10 = scmp.ne.s32.totalorder %s4895_s3, %s4556_s12  ;;  %p4560_p11 = scmp.lt.u32.totalorder %s4556_s12, %s4895_s3 }
  0x39   :  { %p4562_p12 = pnand %p4560_p11, %p4557_p10 }
  0x3b   :  { %4565 = shalt.err (!%p4562_p12)
}
  0x3c   :  { %s4566_s15 = scalar_lea.vmem %s4720_s18, 8192  ;;  %p4571_p0 = scmp.lt.s32.totalorder %s4720_s18, %s4720_s18 }
  0x3d   :  { %p4567_p13 = scmp.ne.s32.totalorder %s4720_s18, %s4566_s15  ;;  %p4572_p1 = scmp.lt.s32.totalorder %s4566_s15, %s4566_s15 }
  0x3f   :  { %p4573_p2 = por %p4572_p1, %p4571_p0 }
  0x41   :  { %p4574_p3 = pnand %p4573_p2, %p4567_p13 }
  0x43   :  { %4577 = shalt.err (!%p4574_p3)
}
  0x44   :  { %s4638_s0 = smov 256   ;;  %s4639_s16 = smov 16  }
  0x45   :  { %53 = dma.hbm_to_vmem [thread:$0]  %s4895_s3, 8192, %s4720_s18, [#allocation6], %s4638_s0, %s4638_s0, %s4639_s16  }
  0x46   :  { %s4640_s22 = smov [#allocation10]   ;;  %s4578_s27 = scalar_lea.hbm %s4899_s7, 16384 }
  0x47   :  { %s75_s23 = sshll.u32 %s4640_s22, 4  ;;  %p4579_p4 = scmp.ne.s32.totalorder %s4899_s7, %s4578_s27  ;;  %s76_s23 = int_to_ptr.vmem [resolvable:$true] %s75_s23 }
  0x48   :  { %p4582_p5 = scmp.lt.u32.totalorder %s4578_s27, %s4899_s7 }
  0x4a   :  { %p4584_p6 = pnand %p4582_p5, %p4579_p4 }
  0x4c   :  { %4587 = shalt.err (!%p4584_p6)
}
  0x4d   :  { %s4588_s30 = scalar_lea.vmem %s76_s23, 16384  ;;  %p4593_p8 = scmp.lt.s32.totalorder %s76_s23, %s76_s23 }
  0x4e   :  { %p4589_p7 = scmp.ne.s32.totalorder %s76_s23, %s4588_s30  ;;  %p4594_p9 = scmp.lt.s32.totalorder %s4588_s30, %s4588_s30 }
  0x50   :  { %p4595_p10 = por %p4594_p9, %p4593_p8 }
  0x52   :  { %p4596_p11 = pnand %p4595_p10, %p4589_p7 }
  0x54   :  { %4599 = shalt.err (!%p4596_p11)
}
  0x55   :  { %81 = dma.hbm_to_vmem [thread:$0]  %s4899_s7, 16384, %s76_s23, [#allocation9], %s4631_s19, %s4631_s19, %s4632_s20  }
  0x56   :  { %4622 = dma.done.wait [#allocation3], 128  }
  0x57   :  { %4623 = vsyncadd [#allocation3], 4294967168 }
  0x58   :  { %4624 = dma.done.wait [#allocation6], 10240  }
  0x59   :  { %4625 = vsyncadd [#allocation6], 4294957056 }
  0x5a   :  { %4626 = dma.done.wait [#allocation9], 49152  }
  0x5b   :  { %4627 = vsyncadd [#allocation9], 4294918144  ;;  %v4641_v0 = vmov 0   ;;  %v4174_v1 = vld [vmem:[#allocation5 + $0x4] ss:$8 sps:$4 sm:$0xff]   ;;  %v100_v17 = vld [vmem:[#allocation2] sm:$0xff]  ;;  %v120_v52 = vlaneseq }
  0x5c   :  { %242 = vmatprep.mubr.bf16.mxu0 %v4641_v0  ;;  %v4176_v2 = vld [vmem:[#allocation5] ss:$8 sps:$4 sm:$0xff]   ;;  %210 = vmatprep.subr.bf16.mxu0 %v4174_v1  ;;  %v4177_v3 = vld [vmem:[#allocation5 + $0x14] ss:$8 sps:$4 sm:$0xff]   ;;  %v4179_v4 = vld [vmem:[#allocation5 + $0x10] ss:$8 sps:$4 sm:$0xff]   ;;  %v101_v20 = vpack.c.bf16 %v100_v17, %v100_v17 }
  0x5d   :  { %211 = vmatpush1.bf16.msra.mxu0 %v4176_v2  ;;  %v4180_v5 = vld [vmem:[#allocation5 + $0x24] ss:$8 sps:$4 sm:$0xff]   ;;  %v4182_v6 = vld [vmem:[#allocation5 + $0x20] ss:$8 sps:$4 sm:$0xff]   ;;  %v4183_v7 = vld [vmem:[#allocation5 + $0x34] ss:$8 sps:$4 sm:$0xff]  }
  0x5e   :  { %212 = vmatprep.subr.bf16.mxu0 %v4177_v3  ;;  %v4185_v8 = vld [vmem:[#allocation5 + $0x30] ss:$8 sps:$4 sm:$0xff]   ;;  %v4186_v9 = vld [vmem:[#allocation5 + $0x44] ss:$8 sps:$4 sm:$0xff]   ;;  %v4188_v10 = vld [vmem:[#allocation5 + $0x40] ss:$8 sps:$4 sm:$0xff]  }
  0x5f   :  { %v4189_v11 = vld [vmem:[#allocation5 + $0x54] ss:$8 sps:$4 sm:$0xff]   ;;  %v4191_v12 = vld [vmem:[#allocation5 + $0x50] ss:$8 sps:$4 sm:$0xff]   ;;  %v4192_v13 = vld [vmem:[#allocation5 + $0x64] ss:$8 sps:$4 sm:$0xff]  }
  0x60   :  { %v4194_v14 = vld [vmem:[#allocation5 + $0x60] ss:$8 sps:$4 sm:$0xff]   ;;  %v4195_v15 = vld [vmem:[#allocation5 + $0x74] ss:$8 sps:$4 sm:$0xff]   ;;  %v4197_v16 = vld [vmem:[#allocation5 + $0x70] ss:$8 sps:$4 sm:$0xff]  }
  0x61   :  { %213 = vmatpush1.bf16.msra.mxu0 %v4179_v4  ;;  %v4200_v18 = vld [vmem:[#allocation7 + $0x4] ss:$16 sps:$4 sm:$0xff]   ;;  %v4198_v19 = vld [vmem:[#allocation7] ss:$16 sps:$4 sm:$0xff]   ;;  %v4248_v51 = vld [vmem:[#allocation7 + $0xc] ss:$16 sps:$4 sm:$0xff]  }
  0x62   :  { %214 = vmatprep.subr.bf16.mxu0 %v4180_v5  ;;  %v4203_v21 = vld [vmem:[#allocation7 + $0x24] ss:$16 sps:$4 sm:$0xff]   ;;  %v4201_v22 = vld [vmem:[#allocation7 + $0x20] ss:$16 sps:$4 sm:$0xff]   ;;  %v4766_v53 = vshrl.u32 %v120_v52, 7  ;;  %s4642_s1 = smov [#allocation11]  }
  0x63   :  { %v4206_v23 = vld [vmem:[#allocation7 + $0x44] ss:$16 sps:$4 sm:$0xff]   ;;  %v4204_v24 = vld [vmem:[#allocation7 + $0x40] ss:$16 sps:$4 sm:$0xff]   ;;  %v118_v55 = vld [vmem:[%s4894_s2] sm:$0x3] }
  0x64   :  { %v4209_v25 = vld [vmem:[#allocation7 + $0x64] ss:$16 sps:$4 sm:$0xff]   ;;  %v4207_v26 = vld [vmem:[#allocation7 + $0x60] ss:$16 sps:$4 sm:$0xff]   ;;  %v4769_v54 = vsub.s32 0, %v4766_v53  ;;  %v4775_v56 = vsub.s32 1, %v4766_v53 }
  0x65   :  { %215 = vmatpush1.bf16.msra.mxu0 %v4182_v6  ;;  %v4212_v27 = vld [vmem:[#allocation7 + $0x84] ss:$16 sps:$4 sm:$0xff]   ;;  %v4210_v28 = vld [vmem:[#allocation7 + $0x80] ss:$16 sps:$4 sm:$0xff]   ;;  %v4246_v6 = vld [vmem:[#allocation7 + $0x8] ss:$16 sps:$4 sm:$0xff]  }
  0x66   :  { %216 = vmatprep.subr.bf16.mxu0 %v4183_v7  ;;  %v4215_v29 = vld [vmem:[#allocation7 + $0xa4] ss:$16 sps:$4 sm:$0xff]   ;;  %v4213_v30 = vld [vmem:[#allocation7 + $0xa0] ss:$16 sps:$4 sm:$0xff]   ;;  %v123_v57 = vrot.slane %v118_v55, %v4769_v54  ;;  %v127_v58 = vrot.slane %v118_v55, %v4775_v56  ;;  %v4261_v17 = vld [vmem:[#allocation7 + $0xa8] ss:$16 sps:$4 sm:$0xff]  }
  0x67   :  { %v4218_v31 = vld [vmem:[#allocation7 + $0xc4] ss:$16 sps:$4 sm:$0xff]   ;;  %v4216_v32 = vld [vmem:[#allocation7 + $0xc0] ss:$16 sps:$4 sm:$0xff]   ;;  %s3648_s10 = sshll.u32 %s4642_s1, 4  ;;  %s3649_s10 = int_to_ptr.vmem [resolvable:$true] %s3648_s10 }
  0x68   :  { %v4221_v33 = vld [vmem:[#allocation7 + $0xe4] ss:$16 sps:$4 sm:$0xff]   ;;  %v4219_v34 = vld [vmem:[#allocation7 + $0xe0] ss:$16 sps:$4 sm:$0xff]   ;;  %p4605_p13 = scmp.lt.s32.totalorder %s3649_s10, %s3649_s10 }
  0x69   :  { %217 = vmatpush1.bf16.msra.mxu0 %v4185_v8  ;;  %v4224_v35 = vld [vmem:[#allocation7 + $0x104] ss:$16 sps:$4 sm:$0xff]   ;;  %v4222_v36 = vld [vmem:[#allocation7 + $0x100] ss:$16 sps:$4 sm:$0xff]   ;;  %v4251_v8 = vld [vmem:[#allocation7 + $0x2c] ss:$16 sps:$4 sm:$0xff]  }
  0x6a   :  { %218 = vmatprep.subr.bf16.mxu0 %v4186_v9  ;;  %v4227_v37 = vld [vmem:[#allocation7 + $0x124] ss:$16 sps:$4 sm:$0xff]   ;;  %v4225_v38 = vld [vmem:[#allocation7 + $0x120] ss:$16 sps:$4 sm:$0xff]   ;;  %v4249_v9 = vld [vmem:[#allocation7 + $0x28] ss:$16 sps:$4 sm:$0xff]  }
  0x6b   :  { %v4230_v39 = vld [vmem:[#allocation7 + $0x144] ss:$16 sps:$4 sm:$0xff]   ;;  %v4228_v40 = vld [vmem:[#allocation7 + $0x140] ss:$16 sps:$4 sm:$0xff]  }
  0x6c   :  { %v4233_v41 = vld [vmem:[#allocation7 + $0x164] ss:$16 sps:$4 sm:$0xff]   ;;  %v4231_v42 = vld [vmem:[#allocation7 + $0x160] ss:$16 sps:$4 sm:$0xff]  }
  0x6d   :  { %219 = vmatpush1.bf16.msra.mxu0 %v4188_v10  ;;  %v4236_v43 = vld [vmem:[#allocation7 + $0x184] ss:$16 sps:$4 sm:$0xff]   ;;  %v4234_v44 = vld [vmem:[#allocation7 + $0x180] ss:$16 sps:$4 sm:$0xff]   ;;  %v4254_v10 = vld [vmem:[#allocation7 + $0x4c] ss:$16 sps:$4 sm:$0xff]  }
  0x6e   :  { %220 = vmatprep.subr.bf16.mxu0 %v4189_v11  ;;  %v4239_v45 = vld [vmem:[#allocation7 + $0x1a4] ss:$16 sps:$4 sm:$0xff]   ;;  %v4237_v46 = vld [vmem:[#allocation7 + $0x1a0] ss:$16 sps:$4 sm:$0xff]   ;;  %v4252_v11 = vld [vmem:[#allocation7 + $0x48] ss:$16 sps:$4 sm:$0xff]  }
  0x6f   :  { %v4242_v47 = vld [vmem:[#allocation7 + $0x1c4] ss:$16 sps:$4 sm:$0xff]   ;;  %v4240_v48 = vld [vmem:[#allocation7 + $0x1c0] ss:$16 sps:$4 sm:$0xff]  }
  0x70   :  { %v4245_v49 = vld [vmem:[#allocation7 + $0x1e4] ss:$16 sps:$4 sm:$0xff]   ;;  %v4243_v50 = vld [vmem:[#allocation7 + $0x1e0] ss:$16 sps:$4 sm:$0xff]  }
  0x71   :  { %221 = vmatpush1.bf16.msra.mxu0 %v4191_v12  ;;  %v4257_v12 = vld [vmem:[#allocation7 + $0x6c] ss:$16 sps:$4 sm:$0xff]   ;;  %v789_v55 = vld [vmem:[#allocation8 + $0x100] sm:$0xff] }
  0x72   :  { %222 = vmatprep.subr.bf16.mxu0 %v4192_v13  ;;  %v4255_v13 = vld [vmem:[#allocation7 + $0x68] ss:$16 sps:$4 sm:$0xff]  }
  0x75   :  { %223 = vmatpush1.bf16.msra.mxu0 %v4194_v14  ;;  %v4260_v14 = vld [vmem:[#allocation7 + $0x8c] ss:$16 sps:$4 sm:$0xff]  }
  0x76   :  { %224 = vmatprep.subr.bf16.mxu0 %v4195_v15  ;;  %v4258_v15 = vld [vmem:[#allocation7 + $0x88] ss:$16 sps:$4 sm:$0xff]  }
  0x79   :  { %225 = vmatpush1.bf16.msra.mxu0 %v4197_v16  ;;  %v4263_v16 = vld [vmem:[#allocation7 + $0xac] ss:$16 sps:$4 sm:$0xff]  }
  0x7a   :  { %663 = vmatprep.subr.bf16.mxu0 %v4200_v18  ;;  %v4266_v18 = vld [vmem:[#allocation7 + $0xcc] ss:$16 sps:$4 sm:$0xff]  }
  0x7c   :  { %243 = vmatmul.mubr.bf16.vlgmr.msra.gmra.mrb[0].mxu0 %v101_v20  ;;  %v4269_v20 = vld [vmem:[#allocation7 + $0xec] ss:$16 sps:$4 sm:$0xff]  }
  0x7d   :  { %664 = vmatpush1.bf16.msra.mxu0 %v4198_v19  ;;  %v4264_v19 = vld [vmem:[#allocation7 + $0xc8] ss:$16 sps:$4 sm:$0xff]  }
  0x7e   :  { %665 = vmatprep.subr.bf16.mxu0 %v4203_v21  ;;  %v4267_v21 = vld [vmem:[#allocation7 + $0xe8] ss:$16 sps:$4 sm:$0xff]  }
  0x81   :  { %666 = vmatpush1.bf16.msra.mxu0 %v4201_v22  ;;  %v4272_v22 = vld [vmem:[#allocation7 + $0x10c] ss:$16 sps:$4 sm:$0xff]  }
  0x82   :  { %667 = vmatprep.subr.bf16.mxu0 %v4206_v23  ;;  %v4270_v23 = vld [vmem:[#allocation7 + $0x108] ss:$16 sps:$4 sm:$0xff]  }
  0x85   :  { %668 = vmatpush1.bf16.msra.mxu0 %v4204_v24  ;;  %v4275_v24 = vld [vmem:[#allocation7 + $0x12c] ss:$16 sps:$4 sm:$0xff]  }
  0x86   :  { %669 = vmatprep.subr.bf16.mxu0 %v4209_v25  ;;  %v4273_v25 = vld [vmem:[#allocation7 + $0x128] ss:$16 sps:$4 sm:$0xff]  }
  0x89   :  { %670 = vmatpush1.bf16.msra.mxu0 %v4207_v26  ;;  %v4278_v26 = vld [vmem:[#allocation7 + $0x14c] ss:$16 sps:$4 sm:$0xff]  }
  0x8a   :  { %671 = vmatprep.subr.bf16.mxu0 %v4212_v27  ;;  %v4276_v27 = vld [vmem:[#allocation7 + $0x148] ss:$16 sps:$4 sm:$0xff]  }
  0x8d   :  { %672 = vmatpush1.bf16.msra.mxu0 %v4210_v28  ;;  %v4281_v28 = vld [vmem:[#allocation7 + $0x16c] ss:$16 sps:$4 sm:$0xff]  }
  0x8e   :  { %673 = vmatprep.subr.bf16.mxu0 %v4215_v29  ;;  %v4279_v29 = vld [vmem:[#allocation7 + $0x168] ss:$16 sps:$4 sm:$0xff]  }
  0x91   :  { %674 = vmatpush1.bf16.msra.mxu0 %v4213_v30  ;;  %v4284_v30 = vld [vmem:[#allocation7 + $0x18c] ss:$16 sps:$4 sm:$0xff]  }
  0x92   :  { %675 = vmatprep.subr.bf16.mxu0 %v4218_v31  ;;  %v4282_v31 = vld [vmem:[#allocation7 + $0x188] ss:$16 sps:$4 sm:$0xff]  }
  0x95   :  { %676 = vmatpush1.bf16.msra.mxu0 %v4216_v32  ;;  %v4287_v32 = vld [vmem:[#allocation7 + $0x1ac] ss:$16 sps:$4 sm:$0xff]  }
  0x96   :  { %677 = vmatprep.subr.bf16.mxu0 %v4221_v33  ;;  %v4285_v33 = vld [vmem:[#allocation7 + $0x1a8] ss:$16 sps:$4 sm:$0xff]  }
  0x99   :  { %678 = vmatpush1.bf16.msra.mxu0 %v4219_v34  ;;  %v4290_v34 = vld [vmem:[#allocation7 + $0x1cc] ss:$16 sps:$4 sm:$0xff]  }
  0x9a   :  { %679 = vmatprep.subr.bf16.mxu0 %v4224_v35  ;;  %v4288_v35 = vld [vmem:[#allocation7 + $0x1c8] ss:$16 sps:$4 sm:$0xff]  }
  0x9d   :  { %680 = vmatpush1.bf16.msra.mxu0 %v4222_v36  ;;  %v4293_v36 = vld [vmem:[#allocation7 + $0x1ec] ss:$16 sps:$4 sm:$0xff]  }
  0x9e   :  { %681 = vmatprep.subr.bf16.mxu0 %v4227_v37  ;;  %v757_v37 = vld [vmem:[#allocation8] sm:$0xff] }
  0xa1   :  { %682 = vmatpush1.bf16.msra.mxu0 %v4225_v38  ;;  %v761_v38 = vld [vmem:[#allocation8 + $0x20] sm:$0xff] }
  0xa2   :  { %683 = vmatprep.subr.bf16.mxu0 %v4230_v39  ;;  %v4291_v39 = vld [vmem:[#allocation7 + $0x1e8] ss:$16 sps:$4 sm:$0xff]  }
  0xa5   :  { %684 = vmatpush1.bf16.msra.mxu0 %v4228_v40  ;;  %v3740_v40 = vcombine.high %v757_v37, %v761_v38 }
  0xa6   :  { %685 = vmatprep.subr.bf16.mxu0 %v4233_v41  ;;  %v765_v41 = vld [vmem:[#allocation8 + $0x40] sm:$0xff] }
  0xa9   :  { %686 = vmatpush1.bf16.msra.mxu0 %v4231_v42  ;;  %v769_v42 = vld [vmem:[#allocation8 + $0x60] sm:$0xff] }
  0xaa   :  { %687 = vmatprep.subr.bf16.mxu0 %v4236_v43  ;;  %v3739_v43 = vcombine.low %v757_v37, %v761_v38 }
  0xad   :  { %688 = vmatpush1.bf16.msra.mxu0 %v4234_v44  ;;  %v3748_v44 = vcombine.high %v765_v41, %v769_v42 }
  0xae   :  { %689 = vmatprep.subr.bf16.mxu0 %v4239_v45  ;;  %v773_v45 = vld [vmem:[#allocation8 + $0x80] sm:$0xff] }
  0xb1   :  { %690 = vmatpush1.bf16.msra.mxu0 %v4237_v46  ;;  %v777_v46 = vld [vmem:[#allocation8 + $0xa0] sm:$0xff] }
  0xb2   :  { %691 = vmatprep.subr.bf16.mxu0 %v4242_v47  ;;  %v3747_v47 = vcombine.low %v765_v41, %v769_v42  ;;  %v853_v41 = vld [vmem:[#allocation8 + $0x300] sm:$0xff] }
  0xb3   :  { %v857_v42 = vld [vmem:[#allocation8 + $0x320] sm:$0xff] }
  0xb5   :  { %692 = vmatpush1.bf16.msra.mxu0 %v4240_v48  ;;  %v3756_v48 = vcombine.high %v773_v45, %v777_v46 }
  0xb6   :  { %693 = vmatprep.subr.bf16.mxu0 %v4245_v49  ;;  %v781_v49 = vld [vmem:[#allocation8 + $0xc0] sm:$0xff] }
  0xb9   :  { %694 = vmatpush1.bf16.msra.mxu0 %v4243_v50  ;;  %v785_v50 = vld [vmem:[#allocation8 + $0xe0] sm:$0xff] }
  0xba   :  { %704 = vmatprep.subr.bf16.mxu0 %v4248_v51  ;;  %v3755_v51 = vcombine.low %v773_v45, %v777_v46  ;;  %v3764_v52 = vcombine.high %v781_v49, %v785_v50  ;;  %v3836_v46 = vcombine.high %v853_v41, %v857_v42 }
 0x14f   :  { %v244_v59 = vpop.f32.mrb[0].mxu0 }
 0x150   :  { %v245_v60 = vadd.f32 %v244_v59, %v123_v57  ;;  %v246_v61 = vpop.f32.mrb[1].mxu0  ;;  %v793_v57 = vld [vmem:[#allocation8 + $0x120] sm:$0xff] }
 0x151   :  { %v247_v62 = vadd.f32 %v246_v61, %v127_v58  ;;  %v248_v63 = vpop.f32.mrb[2].mxu0  ;;  %v3763_v58 = vcombine.low %v781_v49, %v785_v50  ;;  %v3772_v59 = vcombine.high %v789_v55, %v793_v57  ;;  %v801_v61 = vld [vmem:[#allocation8 + $0x160] sm:$0xff] }
 0x152   :  { %v251_v0 = vmul.f32 0.2, %v245_v60  ;;  %v249_v1 = vpop.f32.mrb[3].mxu0  ;;  %v861_v49 = vld [vmem:[#allocation8 + $0x340] sm:$0xff] }
 0x153   :  { %v252_v2 = vmul.f32 0.2, %v247_v62  ;;  %v809_v1 = vld [vmem:[#allocation8 + $0x1a0] sm:$0xff] }
 0x154   :  { %v253_v3 = vmax.f32 %v245_v60, %v251_v0  ;;  %v797_v60 = vld [vmem:[#allocation8 + $0x140] sm:$0xff] }
 0x155   :  { %v254_v4 = vmax.f32 %v247_v62, %v252_v2  ;;  %v3771_v62 = vcombine.low %v789_v55, %v793_v57  ;;  %v3780_v63 = vcombine.high %v797_v60, %v801_v61  ;;  %v805_v0 = vld [vmem:[#allocation8 + $0x180] sm:$0xff]  ;;  %v3779_v2 = vcombine.low %v797_v60, %v801_v61 }
 0x156   :  { %v4779_v7 = vpack.c.bf16 %v253_v3, %v253_v3  ;;  %v3788_v3 = vcombine.high %v805_v0, %v809_v1  ;;  %v865_v50 = vld [vmem:[#allocation8 + $0x360] sm:$0xff]  ;;  %v3835_v55 = vcombine.low %v853_v41, %v857_v42 }
 0x157   :  { %v256_v5 = vpack.c.bf16 %v254_v4, %v254_v4  ;;  %v813_v4 = vld [vmem:[#allocation8 + $0x1c0] sm:$0xff]  ;;  %v3844_v57 = vcombine.high %v861_v49, %v865_v50 }
 0x158   :  { %v869_v60 = vld [vmem:[#allocation8 + $0x380] sm:$0xff] }
 0x159   :  { %695 = vmatprep.mubr.bf16.mxu0 %v256_v5  ;;  %v873_v61 = vld [vmem:[#allocation8 + $0x3a0] sm:$0xff] }
 0x15a   :  { %696 = vmatmul.mubr.bf16.vlgmr.msra.gmra.mrb[4].mxu0 %v4779_v7 }
 0x15b   :  { %705 = vmatpush1.bf16.msra.mxu0 %v4246_v6  ;;  %736 = vmatprep.mubr.bf16.mxu0 %v256_v5  ;;  %v817_v5 = vld [vmem:[#allocation8 + $0x1e0] sm:$0xff]  ;;  %v3787_v6 = vcombine.low %v805_v0, %v809_v1  ;;  %v3843_v0 = vcombine.low %v861_v49, %v865_v50  ;;  %v3852_v1 = vcombine.high %v869_v60, %v873_v61 }
 0x15c   :  { %706 = vmatprep.subr.bf16.mxu0 %v4251_v8  ;;  %v821_v8 = vld [vmem:[#allocation8 + $0x200] sm:$0xff] }
 0x15f   :  { %707 = vmatpush1.bf16.msra.mxu0 %v4249_v9  ;;  %v825_v9 = vld [vmem:[#allocation8 + $0x220] sm:$0xff] }
 0x160   :  { %708 = vmatprep.subr.bf16.mxu0 %v4254_v10  ;;  %v3795_v10 = vcombine.low %v813_v4, %v817_v5 }
 0x163   :  { %709 = vmatpush1.bf16.msra.mxu0 %v4252_v11  ;;  %v3804_v11 = vcombine.high %v821_v8, %v825_v9 }
 0x164   :  { %710 = vmatprep.subr.bf16.mxu0 %v4257_v12  ;;  %v829_v12 = vld [vmem:[#allocation8 + $0x240] sm:$0xff] }
 0x167   :  { %711 = vmatpush1.bf16.msra.mxu0 %v4255_v13  ;;  %v885_v13 = vld [vmem:[#allocation8 + $0x400] sm:$0xff] }
 0x168   :  { %712 = vmatprep.subr.bf16.mxu0 %v4260_v14  ;;  %v889_v14 = vld [vmem:[#allocation8 + $0x420] sm:$0xff] }
 0x16b   :  { %713 = vmatpush1.bf16.msra.mxu0 %v4258_v15  ;;  %v833_v15 = vld [vmem:[#allocation8 + $0x260] sm:$0xff] }
 0x16c   :  { %714 = vmatprep.subr.bf16.mxu0 %v4263_v16  ;;  %v3868_v16 = vcombine.high %v885_v13, %v889_v14 }
 0x16e   :  { %2376 = vmatprep.subr.bf16.mxu1 %v3868_v16  ;;  %v949_v16 = vld [vmem:[#allocation8 + $0x600] sm:$0xff] }
 0x16f   :  { %715 = vmatpush1.bf16.msra.mxu0 %v4261_v17  ;;  %v4783_v17 = vld [vmem:[#allocation8 + $0x8] sm:$0xff] }
 0x170   :  { %716 = vmatprep.subr.bf16.mxu0 %v4266_v18  ;;  %v4785_v18 = vld [vmem:[#allocation8 + $0x28] sm:$0xff] }
 0x173   :  { %717 = vmatpush1.bf16.msra.mxu0 %v4264_v19  ;;  %v3867_v19 = vcombine.low %v885_v13, %v889_v14 }
 0x174   :  { %718 = vmatprep.subr.bf16.mxu0 %v4269_v20  ;;  %v3803_v20 = vcombine.low %v821_v8, %v825_v9  ;;  %v3851_v8 = vcombine.low %v869_v60, %v873_v61 }
 0x175   :  { %2377 = vmatpush1.bf16.msra.mxu1 %v3867_v19  ;;  %v953_v19 = vld [vmem:[#allocation8 + $0x620] sm:$0xff] }
 0x177   :  { %719 = vmatpush1.bf16.msra.mxu0 %v4267_v21  ;;  %v3741_v21 = vcombine.low %v4783_v17, %v4785_v18 }
 0x178   :  { %720 = vmatprep.subr.bf16.mxu0 %v4272_v22  ;;  %v3812_v22 = vcombine.high %v829_v12, %v833_v15 }
 0x17b   :  { %721 = vmatpush1.bf16.msra.mxu0 %v4270_v23  ;;  %v893_v23 = vld [vmem:[#allocation8 + $0x440] sm:$0xff] }
 0x17c   :  { %722 = vmatprep.subr.bf16.mxu0 %v4275_v24  ;;  %v897_v24 = vld [vmem:[#allocation8 + $0x460] sm:$0xff] }
 0x17f   :  { %723 = vmatpush1.bf16.msra.mxu0 %v4273_v25  ;;  %v837_v25 = vld [vmem:[#allocation8 + $0x280] sm:$0xff] }
 0x180   :  { %724 = vmatprep.subr.bf16.mxu0 %v4278_v26  ;;  %v841_v26 = vld [vmem:[#allocation8 + $0x2a0] sm:$0xff] }
 0x181   :  { %v3819_v37 = vcombine.low %v837_v25, %v841_v26 }
 0x183   :  { %725 = vmatpush1.bf16.msra.mxu0 %v4276_v27  ;;  %v3876_v27 = vcombine.high %v893_v23, %v897_v24 }
 0x184   :  { %726 = vmatprep.subr.bf16.mxu0 %v4281_v28  ;;  %v3875_v28 = vcombine.low %v893_v23, %v897_v24  ;;  %v957_v23 = vld [vmem:[#allocation8 + $0x640] sm:$0xff] }
 0x185   :  { %2378 = vmatprep.subr.bf16.mxu1 %v3876_v27  ;;  %v961_v24 = vld [vmem:[#allocation8 + $0x660] sm:$0xff] }
 0x186   :  { %2379 = vmatpush1.bf16.msra.mxu1 %v3875_v28  ;;  %v965_v27 = vld [vmem:[#allocation8 + $0x680] sm:$0xff] }
 0x187   :  { %727 = vmatpush1.bf16.msra.mxu0 %v4279_v29  ;;  %v3811_v29 = vcombine.low %v829_v12, %v833_v15  ;;  %v3742_v15 = vcombine.high %v4783_v17, %v4785_v18  ;;  %v969_v28 = vld [vmem:[#allocation8 + $0x6a0] sm:$0xff]  ;;  %v802_v17 = vld [vmem:[#allocation8 + $0x168] sm:$0xff] }
 0x188   :  { %728 = vmatprep.subr.bf16.mxu0 %v4284_v30  ;;  %v3820_v30 = vcombine.high %v837_v25, %v841_v26  ;;  %v3940_v25 = vcombine.high %v957_v23, %v961_v24  ;;  %v3939_v26 = vcombine.low %v957_v23, %v961_v24  ;;  %v790_v23 = vld [vmem:[#allocation8 + $0x108] sm:$0xff] }
 0x189   :  { %v794_v24 = vld [vmem:[#allocation8 + $0x128] sm:$0xff] }
 0x18a   :  { %v3773_v18 = vcombine.low %v790_v23, %v794_v24 }
 0x18b   :  { %729 = vmatpush1.bf16.msra.mxu0 %v4282_v31  ;;  %v901_v31 = vld [vmem:[#allocation8 + $0x480] sm:$0xff] }
 0x18c   :  { %730 = vmatprep.subr.bf16.mxu0 %v4287_v32  ;;  %v905_v32 = vld [vmem:[#allocation8 + $0x4a0] sm:$0xff] }
 0x18f   :  { %731 = vmatpush1.bf16.msra.mxu0 %v4285_v33  ;;  %v845_v33 = vld [vmem:[#allocation8 + $0x2c0] sm:$0xff] }
 0x190   :  { %732 = vmatprep.subr.bf16.mxu0 %v4290_v34  ;;  %v849_v34 = vld [vmem:[#allocation8 + $0x2e0] sm:$0xff] }
 0x191   :  { %v3828_v38 = vcombine.high %v845_v33, %v849_v34  ;;  %v3827_v45 = vcombine.low %v845_v33, %v849_v34 }
 0x193   :  { %733 = vmatpush1.bf16.msra.mxu0 %v4288_v35  ;;  %v3884_v35 = vcombine.high %v901_v31, %v905_v32 }
 0x194   :  { %734 = vmatprep.subr.bf16.mxu0 %v4293_v36  ;;  %v3883_v36 = vcombine.low %v901_v31, %v905_v32  ;;  %v973_v31 = vld [vmem:[#allocation8 + $0x6c0] sm:$0xff] }
 0x195   :  { %2380 = vmatprep.subr.bf16.mxu1 %v3884_v35  ;;  %v977_v32 = vld [vmem:[#allocation8 + $0x6e0] sm:$0xff] }
 0x196   :  { %2381 = vmatpush1.bf16.msra.mxu1 %v3883_v36  ;;  %v3956_v33 = vcombine.high %v973_v31, %v977_v32  ;;  %v3955_v34 = vcombine.low %v973_v31, %v977_v32  ;;  %v981_v35 = vld [vmem:[#allocation8 + $0x700] sm:$0xff]  ;;  %v814_v32 = vld [vmem:[#allocation8 + $0x1c8] sm:$0xff] }
 0x197   :  { %735 = vmatpush1.bf16.msra.mxu0 %v4291_v39  ;;  %v909_v39 = vld [vmem:[#allocation8 + $0x4c0] sm:$0xff] }
 0x198   :  { %2335 = vmatprep.subr.bf16.mxu0 %v3740_v40  ;;  %v913_v40 = vld [vmem:[#allocation8 + $0x4e0] sm:$0xff] }
 0x199   :  { %v985_v36 = vld [vmem:[#allocation8 + $0x720] sm:$0xff] }
 0x19a   :  { %737 = vmatmul.mubr.bf16.vlgmr.msra.gmra.mrb[8].mxu0 %v4779_v7  ;;  %v3796_v7 = vcombine.high %v813_v4, %v817_v5  ;;  %v877_v4 = vld [vmem:[#allocation8 + $0x3c0] sm:$0xff] }
 0x19b   :  { %2336 = vmatpush1.bf16.msra.mxu0 %v3739_v43  ;;  %v3892_v43 = vcombine.high %v909_v39, %v913_v40  ;;  %v881_v5 = vld [vmem:[#allocation8 + $0x3e0] sm:$0xff] }
 0x19c   :  { %2337 = vmatprep.subr.bf16.mxu0 %v3748_v44  ;;  %v3891_v44 = vcombine.low %v909_v39, %v913_v40  ;;  %v3860_v9 = vcombine.high %v877_v4, %v881_v5  ;;  %v3859_v14 = vcombine.low %v877_v4, %v881_v5  ;;  %v989_v39 = vld [vmem:[#allocation8 + $0x740] sm:$0xff] }
 0x19d   :  { %2382 = vmatprep.subr.bf16.mxu1 %v3892_v43  ;;  %v993_v40 = vld [vmem:[#allocation8 + $0x760] sm:$0xff] }
 0x19e   :  { %2383 = vmatpush1.bf16.msra.mxu1 %v3891_v44  ;;  %v3972_v41 = vcombine.high %v989_v39, %v993_v40  ;;  %v3971_v42 = vcombine.low %v989_v39, %v993_v40  ;;  %v997_v43 = vld [vmem:[#allocation8 + $0x780] sm:$0xff]  ;;  %v830_v40 = vld [vmem:[#allocation8 + $0x248] sm:$0xff] }
 0x19f   :  { %2338 = vmatpush1.bf16.msra.mxu0 %v3747_v47  ;;  %v917_v47 = vld [vmem:[#allocation8 + $0x500] sm:$0xff] }
 0x1a0   :  { %2339 = vmatprep.subr.bf16.mxu0 %v3756_v48  ;;  %v921_v48 = vld [vmem:[#allocation8 + $0x520] sm:$0xff] }
 0x1a1   :  { %v1001_v44 = vld [vmem:[#allocation8 + $0x7a0] sm:$0xff] }
 0x1a3   :  { %2340 = vmatpush1.bf16.msra.mxu0 %v3755_v51  ;;  %v3900_v51 = vcombine.high %v917_v47, %v921_v48 }
 0x1a4   :  { %2341 = vmatprep.subr.bf16.mxu0 %v3764_v52  ;;  %v3899_v52 = vcombine.low %v917_v47, %v921_v48  ;;  %v1005_v47 = vld [vmem:[#allocation8 + $0x7c0] sm:$0xff] }
 0x1a5   :  { %2384 = vmatprep.subr.bf16.mxu1 %v3900_v51  ;;  %v1009_v48 = vld [vmem:[#allocation8 + $0x7e0] sm:$0xff]  ;;  %v4791_v51 = vld [vmem:[#allocation8 + $0x10] sm:$0xff] }
 0x1a6   :  { %2385 = vmatpush1.bf16.msra.mxu1 %v3899_v52  ;;  %v3988_v49 = vcombine.high %v1005_v47, %v1009_v48  ;;  %v3987_v50 = vcombine.low %v1005_v47, %v1009_v48  ;;  %v4793_v52 = vld [vmem:[#allocation8 + $0x30] sm:$0xff]  ;;  %v846_v48 = vld [vmem:[#allocation8 + $0x2c8] sm:$0xff] }
 0x1a7   :  { %2342 = vmatpush1.bf16.msra.mxu0 %v3763_v58  ;;  %v925_v58 = vld [vmem:[#allocation8 + $0x540] sm:$0xff] }
 0x1a8   :  { %2343 = vmatprep.subr.bf16.mxu0 %v3772_v59  ;;  %v929_v59 = vld [vmem:[#allocation8 + $0x560] sm:$0xff] }
 0x1ab   :  { %2344 = vmatpush1.bf16.msra.mxu0 %v3771_v62  ;;  %v3908_v62 = vcombine.high %v925_v58, %v929_v59 }
 0x1ac   :  { %2345 = vmatprep.subr.bf16.mxu0 %v3780_v63  ;;  %v3907_v63 = vcombine.low %v925_v58, %v929_v59  ;;  %v4802_v58 = vld [vmem:[%s4896_s4] sm:$0xf] }
 0x1ad   :  { %2386 = vmatprep.subr.bf16.mxu1 %v3908_v62  ;;  %v326_v59 = vrot.slane %v4802_v58, %v4769_v54  ;;  %v330_v60 = vrot.slane %v4802_v58, %v4775_v56 }
 0x1ae   :  { %2387 = vmatpush1.bf16.msra.mxu1 %v3907_v63 }
 0x1af   :  { %2346 = vmatpush1.bf16.msra.mxu0 %v3779_v2  ;;  %v933_v2 = vld [vmem:[#allocation8 + $0x580] sm:$0xff] }
 0x1b0   :  { %2347 = vmatprep.subr.bf16.mxu0 %v3788_v3  ;;  %v937_v3 = vld [vmem:[#allocation8 + $0x5a0] sm:$0xff] }
 0x1b3   :  { %2348 = vmatpush1.bf16.msra.mxu0 %v3787_v6  ;;  %v3916_v6 = vcombine.high %v933_v2, %v937_v3 }
 0x1b4   :  { %2349 = vmatprep.subr.bf16.mxu0 %v3796_v7  ;;  %v3915_v7 = vcombine.low %v933_v2, %v937_v3 }
 0x1b5   :  { %2388 = vmatprep.subr.bf16.mxu1 %v3916_v6 }
 0x1b6   :  { %2389 = vmatpush1.bf16.msra.mxu1 %v3915_v7  ;;  %v766_v7 = vld [vmem:[#allocation8 + $0x48] sm:$0xff] }
 0x1b7   :  { %2350 = vmatpush1.bf16.msra.mxu0 %v3795_v10  ;;  %v941_v10 = vld [vmem:[#allocation8 + $0x5c0] sm:$0xff] }
 0x1b8   :  { %2351 = vmatprep.subr.bf16.mxu0 %v3804_v11  ;;  %v945_v11 = vld [vmem:[#allocation8 + $0x5e0] sm:$0xff] }
 0x1b9   :  { %v3924_v12 = vcombine.high %v941_v10, %v945_v11  ;;  %v3923_v13 = vcombine.low %v941_v10, %v945_v11 }
 0x1bb   :  { %2352 = vmatpush1.bf16.msra.mxu0 %v3803_v20  ;;  %2390 = vmatprep.subr.bf16.mxu1 %v3924_v12  ;;  %v3932_v20 = vcombine.high %v949_v16, %v953_v19  ;;  %v774_v12 = vld [vmem:[#allocation8 + $0x88] sm:$0xff] }
 0x1bc   :  { %2353 = vmatprep.subr.bf16.mxu0 %v3812_v22  ;;  %2391 = vmatpush1.bf16.msra.mxu1 %v3923_v13  ;;  %v3931_v22 = vcombine.low %v949_v16, %v953_v19  ;;  %v778_v13 = vld [vmem:[#allocation8 + $0xa8] sm:$0xff] }
 0x1bd   :  { %2392 = vmatprep.subr.bf16.mxu1 %v3932_v20  ;;  %v782_v16 = vld [vmem:[#allocation8 + $0xc8] sm:$0xff]  ;;  %v3757_v20 = vcombine.low %v774_v12, %v778_v13 }
 0x1be   :  { %v786_v19 = vld [vmem:[#allocation8 + $0xe8] sm:$0xff] }
 0x1bf   :  { %2354 = vmatpush1.bf16.msra.mxu0 %v3811_v29  ;;  %v3948_v29 = vcombine.high %v965_v27, %v969_v28 }
 0x1c0   :  { %2355 = vmatprep.subr.bf16.mxu0 %v3820_v30  ;;  %2393 = vmatpush1.bf16.msra.mxu1 %v3931_v22  ;;  %v3947_v30 = vcombine.low %v965_v27, %v969_v28  ;;  %v3766_v22 = vcombine.high %v782_v16, %v786_v19  ;;  %v798_v27 = vld [vmem:[#allocation8 + $0x148] sm:$0xff] }
 0x1c1   :  { %2394 = vmatprep.subr.bf16.mxu1 %v3940_v25  ;;  %v3765_v25 = vcombine.low %v782_v16, %v786_v19  ;;  %v806_v28 = vld [vmem:[#allocation8 + $0x188] sm:$0xff] }
 0x1c3   :  { %2356 = vmatpush1.bf16.msra.mxu0 %v3819_v37  ;;  %v3964_v37 = vcombine.high %v981_v35, %v985_v36 }
 0x1c4   :  { %2357 = vmatprep.subr.bf16.mxu0 %v3828_v38  ;;  %2395 = vmatpush1.bf16.msra.mxu1 %v3939_v26  ;;  %v3963_v38 = vcombine.low %v981_v35, %v985_v36  ;;  %v3774_v26 = vcombine.high %v790_v23, %v794_v24  ;;  %v822_v36 = vld [vmem:[#allocation8 + $0x208] sm:$0xff] }
 0x1c5   :  { %2396 = vmatprep.subr.bf16.mxu1 %v3948_v29  ;;  %v810_v29 = vld [vmem:[#allocation8 + $0x1a8] sm:$0xff] }
 0x1c6   :  { %v3790_v31 = vcombine.high %v806_v28, %v810_v29 }
 0x1c7   :  { %2358 = vmatpush1.bf16.msra.mxu0 %v3827_v45  ;;  %v3980_v45 = vcombine.high %v997_v43, %v1001_v44 }
 0x1c8   :  { %2359 = vmatprep.subr.bf16.mxu0 %v3836_v46  ;;  %2397 = vmatpush1.bf16.msra.mxu1 %v3947_v30  ;;  %v3979_v46 = vcombine.low %v997_v43, %v1001_v44  ;;  %v3781_v30 = vcombine.low %v798_v27, %v802_v17  ;;  %v838_v44 = vld [vmem:[#allocation8 + $0x288] sm:$0xff] }
 0x1c9   :  { %2398 = vmatprep.subr.bf16.mxu1 %v3956_v33  ;;  %v818_v33 = vld [vmem:[#allocation8 + $0x1e8] sm:$0xff] }
 0x1ca   :  { %v3798_v35 = vcombine.high %v814_v32, %v818_v33 }
 0x1cb   :  { %2360 = vmatpush1.bf16.msra.mxu0 %v3835_v55  ;;  %v3744_v55 = vcombine.high %v4791_v51, %v4793_v52 }
 0x1cc   :  { %2361 = vmatprep.subr.bf16.mxu0 %v3844_v57  ;;  %2399 = vmatpush1.bf16.msra.mxu1 %v3955_v34  ;;  %v3743_v57 = vcombine.low %v4791_v51, %v4793_v52  ;;  %v3789_v34 = vcombine.low %v806_v28, %v810_v29 }
 0x1cd   :  { %2400 = vmatprep.subr.bf16.mxu1 %v3964_v37  ;;  %v826_v37 = vld [vmem:[#allocation8 + $0x228] sm:$0xff] }
 0x1ce   :  { %v3806_v39 = vcombine.high %v822_v36, %v826_v37 }
 0x1cf   :  { %2362 = vmatpush1.bf16.msra.mxu0 %v3843_v0 }
 0x1d0   :  { %2363 = vmatprep.subr.bf16.mxu0 %v3852_v1  ;;  %2401 = vmatpush1.bf16.msra.mxu1 %v3963_v38  ;;  %v3797_v38 = vcombine.low %v814_v32, %v818_v33  ;;  %v894_v32 = vld [vmem:[#allocation8 + $0x448] sm:$0xff] }
 0x1d1   :  { %2402 = vmatprep.subr.bf16.mxu1 %v3972_v41  ;;  %v834_v41 = vld [vmem:[#allocation8 + $0x268] sm:$0xff] }
 0x1d2   :  { %v3814_v43 = vcombine.high %v830_v40, %v834_v41  ;;  %v898_v33 = vld [vmem:[#allocation8 + $0x468] sm:$0xff] }
 0x1d3   :  { %2364 = vmatpush1.bf16.msra.mxu0 %v3851_v8  ;;  %v770_v8 = vld [vmem:[#allocation8 + $0x68] sm:$0xff] }
 0x1d4   :  { %2365 = vmatprep.subr.bf16.mxu0 %v3860_v9  ;;  %2403 = vmatpush1.bf16.msra.mxu1 %v3971_v42  ;;  %v3750_v11 = vcombine.high %v766_v7, %v770_v8  ;;  %v3805_v42 = vcombine.low %v822_v36, %v826_v37  ;;  %v775_v37 = vld [vmem:[#allocation8 + $0x90] sm:$0xff] }
 0x1d5   :  { %2404 = vmatprep.subr.bf16.mxu1 %v3980_v45  ;;  %v842_v45 = vld [vmem:[#allocation8 + $0x2a8] sm:$0xff] }
 0x1d6   :  { %v3822_v47 = vcombine.high %v838_v44, %v842_v45 }
 0x1d7   :  { %2366 = vmatpush1.bf16.msra.mxu0 %v3859_v14  ;;  %v3749_v14 = vcombine.low %v766_v7, %v770_v8 }
 0x1d8   :  { %2417 = vmatprep.subr.bf16.mxu0 %v3742_v15  ;;  %2405 = vmatpush1.bf16.msra.mxu1 %v3979_v46  ;;  %v3758_v15 = vcombine.high %v774_v12, %v778_v13  ;;  %v3813_v46 = vcombine.low %v830_v40, %v834_v41  ;;  %v878_v13 = vld [vmem:[#allocation8 + $0x3c8] sm:$0xff]  ;;  %v779_v40 = vld [vmem:[#allocation8 + $0xb0] sm:$0xff] }
 0x1d9   :  { %2406 = vmatprep.subr.bf16.mxu1 %v3988_v49  ;;  %v850_v49 = vld [vmem:[#allocation8 + $0x2e8] sm:$0xff] }
 0x1da   :  { %v902_v41 = vld [vmem:[#allocation8 + $0x488] sm:$0xff] }
 0x1dc   :  { %2407 = vmatpush1.bf16.msra.mxu1 %v3987_v50  ;;  %v3821_v50 = vcombine.low %v838_v44, %v842_v45  ;;  %v3877_v44 = vcombine.low %v894_v32, %v898_v33  ;;  %v3760_v45 = vcombine.high %v775_v37, %v779_v40 }
 0x1dd   :  { %2499 = vmatprep.subr.bf16.mxu1 %v3744_v55  ;;  %v3830_v55 = vcombine.high %v846_v48, %v850_v49 }
 0x22d   :  { %v697_v61 = vpop.f32.mrb[4].mxu0 }
 0x22e   :  { %v698_v62 = vadd.f32 %v697_v61, %v326_v59  ;;  %v699_v63 = vpop.f32.mrb[5].mxu0  ;;  %v854_v59 = vld [vmem:[#allocation8 + $0x308] sm:$0xff]  ;;  %v3829_v61 = vcombine.low %v846_v48, %v850_v49  ;;  %v787_v48 = vld [vmem:[#allocation8 + $0xf0] sm:$0xff] }
 0x22f   :  { %v700_v0 = vadd.f32 %v699_v63, %v330_v60  ;;  %v701_v1 = vpop.f32.mrb[6].mxu0  ;;  %v858_v60 = vld [vmem:[#allocation8 + $0x328] sm:$0xff] }
 0x230   :  { %v745_v2 = vmul.f32 0.2, %v698_v62  ;;  %v702_v3 = vpop.f32.mrb[7].mxu0  ;;  %v862_v63 = vld [vmem:[#allocation8 + $0x348] sm:$0xff]  ;;  %v3837_v1 = vcombine.low %v854_v59, %v858_v60 }
 0x231   :  { %v746_v4 = vmul.f32 0.2, %v700_v0  ;;  %v333_v3 = vsub.s32 2, %v4766_v53  ;;  %v910_v49 = vld [vmem:[#allocation8 + $0x4c8] sm:$0xff] }
 0x232   :  { %v749_v5 = vmax.f32 %v698_v62, %v745_v2  ;;  %v3838_v62 = vcombine.high %v854_v59, %v858_v60  ;;  %v791_v59 = vld [vmem:[#allocation8 + $0x110] sm:$0xff] }
 0x233   :  { %v750_v6 = vmax.f32 %v700_v0, %v746_v4  ;;  %v866_v0 = vld [vmem:[#allocation8 + $0x368] sm:$0xff]  ;;  %v337_v4 = vsub.s32 3, %v4766_v53  ;;  %v334_v8 = vrot.slane %v4802_v58, %v333_v3  ;;  %v795_v60 = vld [vmem:[#allocation8 + $0x130] sm:$0xff] }
 0x234   :  { %v4810_v10 = vpack.c.bf16 %v749_v5, %v749_v5  ;;  %v3846_v2 = vcombine.high %v862_v63, %v866_v0  ;;  %v870_v5 = vld [vmem:[#allocation8 + $0x388] sm:$0xff]  ;;  %v3845_v7 = vcombine.low %v862_v63, %v866_v0 }
 0x235   :  { %v4808_v9 = vpack.c.bf16 %v750_v6, %v750_v6  ;;  %v874_v6 = vld [vmem:[#allocation8 + $0x3a8] sm:$0xff]  ;;  %v338_v12 = vrot.slane %v4802_v58, %v337_v4 }
 0x236   :  { %v3853_v16 = vcombine.low %v870_v5, %v874_v6 }
 0x237   :  { %2367 = vmatprep.mubr.bf16.mxu0 %v4808_v9 }
 0x238   :  { %2368 = vmatmul.mubr.bf16.vlgmr.msra.gmra.mrb[12].mxu0 %v4810_v10 }
 0x239   :  { %2418 = vmatpush1.bf16.msra.mxu0 %v3741_v21  ;;  %2449 = vmatprep.mubr.bf16.mxu0 %v4808_v9  ;;  %v3782_v21 = vcombine.high %v798_v27, %v802_v17 }
 0x23a   :  { %2419 = vmatprep.subr.bf16.mxu0 %v3750_v11  ;;  %v3854_v11 = vcombine.high %v870_v5, %v874_v6  ;;  %v799_v5 = vld [vmem:[#allocation8 + $0x150] sm:$0xff] }
 0x23b   :  { %v803_v6 = vld [vmem:[#allocation8 + $0x170] sm:$0xff] }
 0x23d   :  { %2420 = vmatpush1.bf16.msra.mxu0 %v3749_v14  ;;  %v882_v14 = vld [vmem:[#allocation8 + $0x3e8] sm:$0xff] }
 0x23e   :  { %2421 = vmatprep.subr.bf16.mxu0 %v3758_v15 }
 0x241   :  { %2422 = vmatpush1.bf16.msra.mxu0 %v3757_v20 }
 0x242   :  { %2423 = vmatprep.subr.bf16.mxu0 %v3766_v22  ;;  %v3862_v22 = vcombine.high %v878_v13, %v882_v14 }
 0x245   :  { %2424 = vmatpush1.bf16.msra.mxu0 %v3765_v25  ;;  %v886_v25 = vld [vmem:[#allocation8 + $0x408] sm:$0xff] }
 0x246   :  { %2425 = vmatprep.subr.bf16.mxu0 %v3774_v26  ;;  %v890_v26 = vld [vmem:[#allocation8 + $0x428] sm:$0xff] }
 0x247   :  { %v3870_v58 = vcombine.high %v886_v25, %v890_v26 }
 0x249   :  { %2426 = vmatpush1.bf16.msra.mxu0 %v3773_v18 }
 0x24a   :  { %2427 = vmatprep.subr.bf16.mxu0 %v3782_v21  ;;  %v3861_v21 = vcombine.low %v878_v13, %v882_v14  ;;  %v3784_v13 = vcombine.high %v799_v5, %v803_v6 }
 0x24d   :  { %2428 = vmatpush1.bf16.msra.mxu0 %v3781_v30  ;;  %v767_v30 = vld [vmem:[#allocation8 + $0x50] sm:$0xff] }
 0x24e   :  { %2429 = vmatprep.subr.bf16.mxu0 %v3790_v31  ;;  %v771_v31 = vld [vmem:[#allocation8 + $0x70] sm:$0xff] }
 0x251   :  { %2430 = vmatpush1.bf16.msra.mxu0 %v3789_v34 }
 0x252   :  { %2431 = vmatprep.subr.bf16.mxu0 %v3798_v35  ;;  %v3869_v35 = vcombine.low %v886_v25, %v890_v26  ;;  %v815_v26 = vld [vmem:[#allocation8 + $0x1d0] sm:$0xff] }
 0x255   :  { %2432 = vmatpush1.bf16.msra.mxu0 %v3797_v38  ;;  %v3752_v38 = vcombine.high %v767_v30, %v771_v31 }
 0x256   :  { %2433 = vmatprep.subr.bf16.mxu0 %v3806_v39  ;;  %v3878_v39 = vcombine.high %v894_v32, %v898_v33  ;;  %v950_v32 = vld [vmem:[#allocation8 + $0x608] sm:$0xff] }
 0x257   :  { %v954_v33 = vld [vmem:[#allocation8 + $0x628] sm:$0xff] }
 0x259   :  { %2434 = vmatpush1.bf16.msra.mxu0 %v3805_v42  ;;  %v906_v42 = vld [vmem:[#allocation8 + $0x4a8] sm:$0xff] }
 0x25a   :  { %2435 = vmatprep.subr.bf16.mxu0 %v3814_v43  ;;  %v3751_v43 = vcombine.low %v767_v30, %v771_v31  ;;  %v3885_v51 = vcombine.low %v902_v41, %v906_v42  ;;  %v823_v30 = vld [vmem:[#allocation8 + $0x210] sm:$0xff] }
 0x25b   :  { %v827_v31 = vld [vmem:[#allocation8 + $0x230] sm:$0xff] }
 0x25d   :  { %2436 = vmatpush1.bf16.msra.mxu0 %v3813_v46  ;;  %v3886_v46 = vcombine.high %v902_v41, %v906_v42  ;;  %v835_v41 = vld [vmem:[#allocation8 + $0x270] sm:$0xff]  ;;  %v958_v42 = vld [vmem:[#allocation8 + $0x648] sm:$0xff] }
 0x25e   :  { %2437 = vmatprep.subr.bf16.mxu0 %v3822_v47  ;;  %v783_v47 = vld [vmem:[#allocation8 + $0xd0] sm:$0xff] }
 0x25f   :  { %v3768_v52 = vcombine.high %v783_v47, %v787_v48  ;;  %v3767_v63 = vcombine.low %v783_v47, %v787_v48  ;;  %v839_v48 = vld [vmem:[#allocation8 + $0x290] sm:$0xff] }
 0x261   :  { %2438 = vmatpush1.bf16.msra.mxu0 %v3821_v50  ;;  %v914_v50 = vld [vmem:[#allocation8 + $0x4e8] sm:$0xff] }
 0x262   :  { %2439 = vmatprep.subr.bf16.mxu0 %v3830_v55  ;;  %v3759_v55 = vcombine.low %v775_v37, %v779_v40  ;;  %v3893_v0 = vcombine.low %v910_v49, %v914_v50  ;;  %v831_v40 = vld [vmem:[#allocation8 + $0x250] sm:$0xff] }
 0x265   :  { %2440 = vmatpush1.bf16.msra.mxu0 %v3829_v61  ;;  %v918_v61 = vld [vmem:[#allocation8 + $0x508] sm:$0xff] }
 0x266   :  { %2441 = vmatprep.subr.bf16.mxu0 %v3838_v62  ;;  %v922_v62 = vld [vmem:[#allocation8 + $0x528] sm:$0xff] }
 0x269   :  { %2442 = vmatpush1.bf16.msra.mxu0 %v3837_v1  ;;  %v3776_v1 = vcombine.high %v791_v59, %v795_v60 }
 0x26a   :  { %2443 = vmatprep.subr.bf16.mxu0 %v3846_v2  ;;  %v3902_v2 = vcombine.high %v918_v61, %v922_v62 }
 0x26d   :  { %v738_v15 = vpop.f32.mrb[8].mxu0  ;;  %2444 = vmatpush1.bf16.msra.mxu0 %v3845_v7  ;;  %v926_v7 = vld [vmem:[#allocation8 + $0x548] sm:$0xff] }
 0x26e   :  { %v739_v19 = vadd.f32 %v738_v15, %v334_v8  ;;  %v740_v20 = vpop.f32.mrb[9].mxu0  ;;  %2445 = vmatprep.subr.bf16.mxu0 %v3854_v11  ;;  %v930_v8 = vld [vmem:[#allocation8 + $0x568] sm:$0xff]  ;;  %v3775_v11 = vcombine.low %v791_v59, %v795_v60  ;;  %v807_v15 = vld [vmem:[#allocation8 + $0x190] sm:$0xff] }
 0x26f   :  { %v741_v23 = vadd.f32 %v740_v20, %v338_v12  ;;  %v742_v24 = vpop.f32.mrb[10].mxu0  ;;  %v3901_v12 = vcombine.low %v918_v61, %v922_v62  ;;  %v3910_v14 = vcombine.high %v926_v7, %v930_v8  ;;  %v938_v20 = vld [vmem:[#allocation8 + $0x5a8] sm:$0xff]  ;;  %v847_v60 = vld [vmem:[#allocation8 + $0x2d0] sm:$0xff] }
 0x270   :  { %v747_v27 = vmul.f32 0.2, %v739_v19  ;;  %v743_v17 = vpop.f32.mrb[11].mxu0  ;;  %v851_v61 = vld [vmem:[#allocation8 + $0x2f0] sm:$0xff]  ;;  %v974_v62 = vld [vmem:[#allocation8 + $0x6c8] sm:$0xff] }
 0x271   :  { %v748_v18 = vmul.f32 0.2, %v741_v23  ;;  %2446 = vmatpush1.bf16.msra.mxu0 %v3853_v16  ;;  %v811_v16 = vld [vmem:[#allocation8 + $0x1b0] sm:$0xff]  ;;  %v942_v17 = vld [vmem:[#allocation8 + $0x5c8] sm:$0xff] }
 0x272   :  { %v751_v28 = vmax.f32 %v739_v19, %v747_v27  ;;  %2447 = vmatprep.subr.bf16.mxu0 %v3862_v22  ;;  %v934_v19 = vld [vmem:[#allocation8 + $0x588] sm:$0xff]  ;;  %v3783_v22 = vcombine.low %v799_v5, %v803_v6  ;;  %v3792_v24 = vcombine.high %v807_v15, %v811_v16  ;;  %v819_v27 = vld [vmem:[#allocation8 + $0x1f0] sm:$0xff] }
 0x273   :  { %v752_v29 = vmax.f32 %v741_v23, %v748_v18  ;;  %v3909_v23 = vcombine.low %v926_v7, %v930_v8  ;;  %v3918_v25 = vcombine.high %v934_v19, %v938_v20  ;;  %v946_v18 = vld [vmem:[#allocation8 + $0x5e8] sm:$0xff]  ;;  %v855_v6 = vld [vmem:[#allocation8 + $0x310] sm:$0xff] }
 0x274   :  { %v4828_v36 = vpack.c.bf16 %v751_v28, %v751_v28  ;;  %v3917_v28 = vcombine.low %v934_v19, %v938_v20  ;;  %v3925_v37 = vcombine.low %v942_v17, %v946_v18  ;;  %v859_v7 = vld [vmem:[#allocation8 + $0x330] sm:$0xff]  ;;  %v982_v8 = vld [vmem:[#allocation8 + $0x708] sm:$0xff] }
 0x275   :  { %v4826_v34 = vpack.c.bf16 %v752_v29, %v752_v29  ;;  %2448 = vmatpush1.bf16.msra.mxu0 %v3861_v21  ;;  %v3791_v21 = vcombine.low %v807_v15, %v811_v16  ;;  %v3926_v29 = vcombine.high %v942_v17, %v946_v18  ;;  %v863_v16 = vld [vmem:[#allocation8 + $0x350] sm:$0xff]  ;;  %v990_v20 = vld [vmem:[#allocation8 + $0x748] sm:$0xff] }
 0x276   :  { %2458 = vmatprep.subr.bf16.mxu0 %v3870_v58  ;;  %v3800_v58 = vcombine.high %v815_v26, %v819_v27  ;;  %v867_v19 = vld [vmem:[#allocation8 + $0x370] sm:$0xff]  ;;  %v998_v18 = vld [vmem:[#allocation8 + $0x788] sm:$0xff] }
 0x277   :  { %2408 = vmatprep.mubr.bf16.mxu1 %v4826_v34  ;;  %v875_v17 = vld [vmem:[#allocation8 + $0x3b0] sm:$0xff] }
 0x278   :  { %2409 = vmatmul.mubr.bf16.vlgmr.msra.gmra.mrb[0].mxu1 %v4828_v36  ;;  %2450 = vmatmul.mubr.bf16.vlgmr.msra.gmra.mrb[16].mxu0 %v4810_v10 }
 0x279   :  { %2500 = vmatpush1.bf16.msra.mxu1 %v3743_v57  ;;  %2459 = vmatpush1.bf16.msra.mxu0 %v3869_v35  ;;  %v3894_v57 = vcombine.high %v910_v49, %v914_v50  ;;  %v3799_v35 = vcombine.low %v815_v26, %v819_v27  ;;  %v843_v49 = vld [vmem:[#allocation8 + $0x2b0] sm:$0xff]  ;;  %v966_v50 = vld [vmem:[#allocation8 + $0x688] sm:$0xff] }
 0x27a   :  { %2490 = vmatprep.mubr.bf16.mxu0 %v4826_v34  ;;  %2531 = vmatprep.mubr.bf16.mxu1 %v4808_v9  ;;  %v871_v27 = vld [vmem:[#allocation8 + $0x390] sm:$0xff] }
 0x27b   :  { %2501 = vmatprep.subr.bf16.mxu1 %v3752_v38  ;;  %2460 = vmatprep.subr.bf16.mxu0 %v3878_v39  ;;  %v3808_v38 = vcombine.high %v823_v30, %v827_v31  ;;  %v3934_v39 = vcombine.high %v950_v32, %v954_v33 }
 0x27d   :  { %2502 = vmatpush1.bf16.msra.mxu1 %v3751_v43  ;;  %2461 = vmatpush1.bf16.msra.mxu0 %v3877_v44  ;;  %v962_v43 = vld [vmem:[#allocation8 + $0x668] sm:$0xff]  ;;  %v3807_v44 = vcombine.low %v823_v30, %v827_v31  ;;  %v879_v31 = vld [vmem:[#allocation8 + $0x3d0] sm:$0xff] }
 0x27e   :  { %2503 = vmatprep.subr.bf16.mxu1 %v3760_v45  ;;  %2462 = vmatprep.subr.bf16.mxu0 %v3886_v46  ;;  %v3933_v45 = vcombine.low %v950_v32, %v954_v33  ;;  %v3816_v46 = vcombine.high %v831_v40, %v835_v41  ;;  %v3942_v47 = vcombine.high %v958_v42, %v962_v43  ;;  %v883_v32 = vld [vmem:[#allocation8 + $0x3f0] sm:$0xff]  ;;  %v1006_v33 = vld [vmem:[#allocation8 + $0x7c8] sm:$0xff] }
 0x281   :  { %2504 = vmatpush1.bf16.msra.mxu1 %v3759_v55  ;;  %2463 = vmatpush1.bf16.msra.mxu0 %v3885_v51  ;;  %v970_v55 = vld [vmem:[#allocation8 + $0x6a8] sm:$0xff]  ;;  %v3815_v51 = vcombine.low %v831_v40, %v835_v41  ;;  %v887_v41 = vld [vmem:[#allocation8 + $0x410] sm:$0xff] }
 0x282   :  { %2505 = vmatprep.subr.bf16.mxu1 %v3768_v52  ;;  %2464 = vmatprep.subr.bf16.mxu0 %v3894_v57  ;;  %v3941_v52 = vcombine.low %v958_v42, %v962_v43  ;;  %v3824_v57 = vcombine.high %v839_v48, %v843_v49  ;;  %v3950_v59 = vcombine.high %v966_v50, %v970_v55  ;;  %v891_v42 = vld [vmem:[#allocation8 + $0x430] sm:$0xff]  ;;  %v760_v43 = vld [vmem:[#allocation8 + $0x18] sm:$0xff] }
 0x285   :  { %2506 = vmatpush1.bf16.msra.mxu1 %v3767_v63  ;;  %2465 = vmatpush1.bf16.msra.mxu0 %v3893_v0  ;;  %v978_v63 = vld [vmem:[#allocation8 + $0x6e8] sm:$0xff]  ;;  %v3823_v0 = vcombine.low %v839_v48, %v843_v49  ;;  %v895_v49 = vld [vmem:[#allocation8 + $0x450] sm:$0xff] }
 0x286   :  { %2507 = vmatprep.subr.bf16.mxu1 %v3776_v1  ;;  %2466 = vmatprep.subr.bf16.mxu0 %v3902_v2  ;;  %v3949_v1 = vcombine.low %v966_v50, %v970_v55  ;;  %v3832_v2 = vcombine.high %v847_v60, %v851_v61  ;;  %v3958_v5 = vcombine.high %v974_v62, %v978_v63  ;;  %v899_v50 = vld [vmem:[#allocation8 + $0x470] sm:$0xff]  ;;  %v768_v55 = vld [vmem:[#allocation8 + $0x58] sm:$0xff] }
 0x289   :  { %2508 = vmatpush1.bf16.msra.mxu1 %v3775_v11  ;;  %2467 = vmatpush1.bf16.msra.mxu0 %v3901_v12  ;;  %v986_v11 = vld [vmem:[#allocation8 + $0x728] sm:$0xff]  ;;  %v3831_v12 = vcombine.low %v847_v60, %v851_v61  ;;  %v903_v61 = vld [vmem:[#allocation8 + $0x490] sm:$0xff] }
 0x28a   :  { %2509 = vmatprep.subr.bf16.mxu1 %v3784_v13  ;;  %2468 = vmatprep.subr.bf16.mxu0 %v3910_v14  ;;  %v3957_v13 = vcombine.low %v974_v62, %v978_v63  ;;  %v3840_v14 = vcombine.high %v855_v6, %v859_v7  ;;  %v3966_v15 = vcombine.high %v982_v8, %v986_v11  ;;  %v907_v62 = vld [vmem:[#allocation8 + $0x4b0] sm:$0xff]  ;;  %v776_v63 = vld [vmem:[#allocation8 + $0x98] sm:$0xff] }
 0x28d   :  { %2510 = vmatpush1.bf16.msra.mxu1 %v3783_v22  ;;  %2469 = vmatpush1.bf16.msra.mxu0 %v3909_v23  ;;  %v994_v22 = vld [vmem:[#allocation8 + $0x768] sm:$0xff]  ;;  %v3839_v23 = vcombine.low %v855_v6, %v859_v7  ;;  %v911_v7 = vld [vmem:[#allocation8 + $0x4d0] sm:$0xff] }
 0x28e   :  { %2511 = vmatprep.subr.bf16.mxu1 %v3792_v24  ;;  %2470 = vmatprep.subr.bf16.mxu0 %v3918_v25  ;;  %v3965_v24 = vcombine.low %v982_v8, %v986_v11  ;;  %v3848_v25 = vcombine.high %v863_v16, %v867_v19  ;;  %v3974_v26 = vcombine.high %v990_v20, %v994_v22  ;;  %v915_v8 = vld [vmem:[#allocation8 + $0x4f0] sm:$0xff]  ;;  %v784_v11 = vld [vmem:[#allocation8 + $0xd8] sm:$0xff] }
 0x291   :  { %2512 = vmatpush1.bf16.msra.mxu1 %v3791_v21  ;;  %2471 = vmatpush1.bf16.msra.mxu0 %v3917_v28  ;;  %v1002_v21 = vld [vmem:[#allocation8 + $0x7a8] sm:$0xff]  ;;  %v3847_v28 = vcombine.low %v863_v16, %v867_v19  ;;  %v919_v19 = vld [vmem:[#allocation8 + $0x510] sm:$0xff] }
 0x292   :  { %2513 = vmatprep.subr.bf16.mxu1 %v3800_v58  ;;  %2472 = vmatprep.subr.bf16.mxu0 %v3926_v29  ;;  %v3973_v58 = vcombine.low %v990_v20, %v994_v22  ;;  %v3856_v29 = vcombine.high %v871_v27, %v875_v17  ;;  %v3982_v30 = vcombine.high %v998_v18, %v1002_v21  ;;  %v923_v20 = vld [vmem:[#allocation8 + $0x530] sm:$0xff]  ;;  %v796_v22 = vld [vmem:[#allocation8 + $0x138] sm:$0xff] }
 0x295   :  { %2514 = vmatpush1.bf16.msra.mxu1 %v3799_v35  ;;  %2473 = vmatpush1.bf16.msra.mxu0 %v3925_v37  ;;  %v1010_v35 = vld [vmem:[#allocation8 + $0x7e8] sm:$0xff]  ;;  %v3855_v37 = vcombine.low %v871_v27, %v875_v17  ;;  %v927_v27 = vld [vmem:[#allocation8 + $0x550] sm:$0xff] }
 0x296   :  { %2515 = vmatprep.subr.bf16.mxu1 %v3808_v38  ;;  %2474 = vmatprep.subr.bf16.mxu0 %v3934_v39  ;;  %v3981_v38 = vcombine.low %v998_v18, %v1002_v21  ;;  %v3864_v39 = vcombine.high %v879_v31, %v883_v32  ;;  %v3990_v40 = vcombine.high %v1006_v33, %v1010_v35  ;;  %v931_v17 = vld [vmem:[#allocation8 + $0x570] sm:$0xff]  ;;  %v800_v18 = vld [vmem:[#allocation8 + $0x158] sm:$0xff] }
 0x297   :  { %v804_v21 = vld [vmem:[#allocation8 + $0x178] sm:$0xff] }
 0x299   :  { %2516 = vmatpush1.bf16.msra.mxu1 %v3807_v44  ;;  %2475 = vmatpush1.bf16.msra.mxu0 %v3933_v45  ;;  %v764_v44 = vld [vmem:[#allocation8 + $0x38] sm:$0xff]  ;;  %v3863_v45 = vcombine.low %v879_v31, %v883_v32  ;;  %v935_v31 = vld [vmem:[#allocation8 + $0x590] sm:$0xff] }
 0x29a   :  { %2517 = vmatprep.subr.bf16.mxu1 %v3816_v46  ;;  %2476 = vmatprep.subr.bf16.mxu0 %v3942_v47  ;;  %v3989_v46 = vcombine.low %v1006_v33, %v1010_v35  ;;  %v3872_v47 = vcombine.high %v887_v41, %v891_v42  ;;  %v3746_v48 = vcombine.high %v760_v43, %v764_v44  ;;  %v939_v32 = vld [vmem:[#allocation8 + $0x5b0] sm:$0xff]  ;;  %v808_v33 = vld [vmem:[#allocation8 + $0x198] sm:$0xff] }
 0x29b   :  { %v812_v35 = vld [vmem:[#allocation8 + $0x1b8] sm:$0xff] }
 0x29d   :  { %2518 = vmatpush1.bf16.msra.mxu1 %v3815_v51  ;;  %2477 = vmatpush1.bf16.msra.mxu0 %v3941_v52  ;;  %v772_v51 = vld [vmem:[#allocation8 + $0x78] sm:$0xff]  ;;  %v3871_v52 = vcombine.low %v887_v41, %v891_v42  ;;  %v943_v41 = vld [vmem:[#allocation8 + $0x5d0] sm:$0xff] }
 0x29e   :  { %2519 = vmatprep.subr.bf16.mxu1 %v3824_v57  ;;  %2478 = vmatprep.subr.bf16.mxu0 %v3950_v59  ;;  %v3745_v57 = vcombine.low %v760_v43, %v764_v44  ;;  %v3880_v59 = vcombine.high %v895_v49, %v899_v50  ;;  %v3754_v60 = vcombine.high %v768_v55, %v772_v51  ;;  %v947_v42 = vld [vmem:[#allocation8 + $0x5f0] sm:$0xff]  ;;  %v816_v43 = vld [vmem:[#allocation8 + $0x1d8] sm:$0xff] }
 0x29f   :  { %v820_v44 = vld [vmem:[#allocation8 + $0x1f8] sm:$0xff] }
 0x2a1   :  { %2520 = vmatpush1.bf16.msra.mxu1 %v3823_v0  ;;  %2479 = vmatpush1.bf16.msra.mxu0 %v3949_v1  ;;  %v780_v0 = vld [vmem:[#allocation8 + $0xb8] sm:$0xff]  ;;  %v3879_v1 = vcombine.low %v895_v49, %v899_v50  ;;  %v951_v49 = vld [vmem:[#allocation8 + $0x610] sm:$0xff] }
 0x2a2   :  { %2521 = vmatprep.subr.bf16.mxu1 %v3832_v2  ;;  %2480 = vmatprep.subr.bf16.mxu0 %v3958_v5  ;;  %v3753_v2 = vcombine.low %v768_v55, %v772_v51  ;;  %v3888_v5 = vcombine.high %v903_v61, %v907_v62  ;;  %v3762_v6 = vcombine.high %v776_v63, %v780_v0  ;;  %v955_v50 = vld [vmem:[#allocation8 + $0x630] sm:$0xff]  ;;  %v824_v55 = vld [vmem:[#allocation8 + $0x218] sm:$0xff] }
 0x2a3   :  { %v828_v51 = vld [vmem:[#allocation8 + $0x238] sm:$0xff] }
 0x2a5   :  { %2522 = vmatpush1.bf16.msra.mxu1 %v3831_v12  ;;  %2481 = vmatpush1.bf16.msra.mxu0 %v3957_v13  ;;  %v788_v12 = vld [vmem:[#allocation8 + $0xf8] sm:$0xff]  ;;  %v3887_v13 = vcombine.low %v903_v61, %v907_v62  ;;  %v959_v61 = vld [vmem:[#allocation8 + $0x650] sm:$0xff] }
 0x2a6   :  { %2523 = vmatprep.subr.bf16.mxu1 %v3840_v14  ;;  %2482 = vmatprep.subr.bf16.mxu0 %v3966_v15  ;;  %v3761_v14 = vcombine.low %v776_v63, %v780_v0  ;;  %v3896_v15 = vcombine.high %v911_v7, %v915_v8  ;;  %v3770_v16 = vcombine.high %v784_v11, %v788_v12  ;;  %v963_v62 = vld [vmem:[#allocation8 + $0x670] sm:$0xff]  ;;  %v832_v63 = vld [vmem:[#allocation8 + $0x258] sm:$0xff] }
 0x2a7   :  { %v836_v0 = vld [vmem:[#allocation8 + $0x278] sm:$0xff] }
 0x2a9   :  { %2524 = vmatpush1.bf16.msra.mxu1 %v3839_v23  ;;  %2483 = vmatpush1.bf16.msra.mxu0 %v3965_v24  ;;  %v3895_v23 = vcombine.low %v911_v7, %v915_v8  ;;  %v3769_v24 = vcombine.low %v784_v11, %v788_v12  ;;  %v967_v7 = vld [vmem:[#allocation8 + $0x690] sm:$0xff]  ;;  %v840_v11 = vld [vmem:[#allocation8 + $0x298] sm:$0xff] }
 0x2aa   :  { %2525 = vmatprep.subr.bf16.mxu1 %v3848_v25  ;;  %2484 = vmatprep.subr.bf16.mxu0 %v3974_v26  ;;  %v3904_v25 = vcombine.high %v919_v19, %v923_v20  ;;  %v971_v8 = vld [vmem:[#allocation8 + $0x6b0] sm:$0xff]  ;;  %v844_v12 = vld [vmem:[#allocation8 + $0x2b8] sm:$0xff] }
 0x2ad   :  { %2526 = vmatpush1.bf16.msra.mxu1 %v3847_v28  ;;  %2485 = vmatpush1.bf16.msra.mxu0 %v3973_v58  ;;  %v3903_v28 = vcombine.low %v919_v19, %v923_v20  ;;  %v975_v19 = vld [vmem:[#allocation8 + $0x6d0] sm:$0xff] }
 0x2ae   :  { %2527 = vmatprep.subr.bf16.mxu1 %v3856_v29  ;;  %2486 = vmatprep.subr.bf16.mxu0 %v3982_v30  ;;  %v3912_v29 = vcombine.high %v927_v27, %v931_v17  ;;  %v3786_v30 = vcombine.high %v800_v18, %v804_v21  ;;  %v979_v20 = vld [vmem:[#allocation8 + $0x6f0] sm:$0xff] }
 0x2b1   :  { %2528 = vmatpush1.bf16.msra.mxu1 %v3855_v37  ;;  %2487 = vmatpush1.bf16.msra.mxu0 %v3981_v38  ;;  %v3911_v37 = vcombine.low %v927_v27, %v931_v17  ;;  %v3785_v38 = vcombine.low %v800_v18, %v804_v21  ;;  %v983_v27 = vld [vmem:[#allocation8 + $0x710] sm:$0xff]  ;;  %v856_v18 = vld [vmem:[#allocation8 + $0x318] sm:$0xff] }
 0x2b2   :  { %2529 = vmatprep.subr.bf16.mxu1 %v3864_v39  ;;  %2488 = vmatprep.subr.bf16.mxu0 %v3990_v40  ;;  %v3920_v39 = vcombine.high %v935_v31, %v939_v32  ;;  %v3794_v40 = vcombine.high %v808_v33, %v812_v35  ;;  %v987_v17 = vld [vmem:[#allocation8 + $0x730] sm:$0xff]  ;;  %v860_v21 = vld [vmem:[#allocation8 + $0x338] sm:$0xff] }
 0x2b5   :  { %2530 = vmatpush1.bf16.msra.mxu1 %v3863_v45  ;;  %2489 = vmatpush1.bf16.msra.mxu0 %v3989_v46  ;;  %v3919_v45 = vcombine.low %v935_v31, %v939_v32  ;;  %v3793_v46 = vcombine.low %v808_v33, %v812_v35  ;;  %v991_v31 = vld [vmem:[#allocation8 + $0x750] sm:$0xff]  ;;  %v864_v33 = vld [vmem:[#allocation8 + $0x358] sm:$0xff] }
 0x2b6   :  { %2540 = vmatprep.subr.bf16.mxu1 %v3872_v47  ;;  %2581 = vmatprep.subr.bf16.mxu0 %v3746_v48  ;;  %v3928_v47 = vcombine.high %v943_v41, %v947_v42  ;;  %v3802_v48 = vcombine.high %v816_v43, %v820_v44  ;;  %v995_v32 = vld [vmem:[#allocation8 + $0x770] sm:$0xff]  ;;  %v868_v35 = vld [vmem:[#allocation8 + $0x378] sm:$0xff] }
 0x2b8   :  { %2532 = vmatmul.mubr.bf16.vlgmr.msra.gmra.mrb[4].mxu1 %v4810_v10  ;;  %2491 = vmatmul.mubr.bf16.vlgmr.msra.gmra.mrb[16].mxu0 %v4828_v36 }
 0x2b9   :  { %2541 = vmatpush1.bf16.msra.mxu1 %v3871_v52  ;;  %2572 = vmatprep.mubr.bf16.mxu1 %v4826_v34  ;;  %v3927_v52 = vcombine.low %v943_v41, %v947_v42  ;;  %v999_v41 = vld [vmem:[#allocation8 + $0x790] sm:$0xff] }
 0x2ba   :  { %2582 = vmatpush1.bf16.msra.mxu0 %v3745_v57  ;;  %2613 = vmatprep.mubr.bf16.mxu0 %v4808_v9  ;;  %v792_v9 = vld [vmem:[#allocation8 + $0x118] sm:$0xff]  ;;  %v3801_v57 = vcombine.low %v816_v43, %v820_v44  ;;  %v1003_v42 = vld [vmem:[#allocation8 + $0x7b0] sm:$0xff] }
 0x2bb   :  { %2542 = vmatprep.subr.bf16.mxu1 %v3880_v59  ;;  %2583 = vmatprep.subr.bf16.mxu0 %v3754_v60  ;;  %v3778_v26 = vcombine.high %v792_v9, %v796_v22  ;;  %v3777_v58 = vcombine.low %v792_v9, %v796_v22  ;;  %v3936_v59 = vcombine.high %v951_v49, %v955_v50  ;;  %v848_v9 = vld [vmem:[#allocation8 + $0x2d8] sm:$0xff] }
 0x2bc   :  { %v3810_v60 = vcombine.high %v824_v55, %v828_v51  ;;  %v852_v22 = vld [vmem:[#allocation8 + $0x2f8] sm:$0xff] }
 0x2bd   :  { %2543 = vmatpush1.bf16.msra.mxu1 %v3879_v1  ;;  %v3935_v1 = vcombine.low %v951_v49, %v955_v50  ;;  %v872_v43 = vld [vmem:[#allocation8 + $0x398] sm:$0xff]  ;;  %v1007_v49 = vld [vmem:[#allocation8 + $0x7d0] sm:$0xff] }
 0x2be   :  { %2584 = vmatpush1.bf16.msra.mxu0 %v3753_v2  ;;  %2544 = vmatprep.subr.bf16.mxu1 %v3888_v5  ;;  %v3809_v2 = vcombine.low %v824_v55, %v828_v51  ;;  %v3944_v5 = vcombine.high %v959_v61, %v963_v62  ;;  %v876_v44 = vld [vmem:[#allocation8 + $0x3b8] sm:$0xff]  ;;  %v1011_v50 = vld [vmem:[#allocation8 + $0x7f0] sm:$0xff] }
 0x2bf   :  { %2585 = vmatprep.subr.bf16.mxu0 %v3762_v6  ;;  %v3818_v6 = vcombine.high %v832_v63, %v836_v0  ;;  %v880_v55 = vld [vmem:[#allocation8 + $0x3d8] sm:$0xff] }
 0x2c0   :  { %v884_v51 = vld [vmem:[#allocation8 + $0x3f8] sm:$0xff] }
 0x2c1   :  { %2545 = vmatpush1.bf16.msra.mxu1 %v3887_v13  ;;  %v3943_v13 = vcombine.low %v959_v61, %v963_v62  ;;  %v888_v61 = vld [vmem:[#allocation8 + $0x418] sm:$0xff] }
 0x2c2   :  { %2586 = vmatpush1.bf16.msra.mxu0 %v3761_v14  ;;  %2546 = vmatprep.subr.bf16.mxu1 %v3896_v15  ;;  %v3817_v14 = vcombine.low %v832_v63, %v836_v0  ;;  %v3952_v15 = vcombine.high %v967_v7, %v971_v8  ;;  %v892_v62 = vld [vmem:[#allocation8 + $0x438] sm:$0xff]  ;;  %v3991_v63 = vcombine.low %v1007_v49, %v1011_v50 }
 0x2c3   :  { %2587 = vmatprep.subr.bf16.mxu0 %v3770_v16  ;;  %v3826_v16 = vcombine.high %v840_v11, %v844_v12  ;;  %v3865_v0 = vcombine.low %v880_v55, %v884_v51 }
 0x2c5   :  { %2547 = vmatpush1.bf16.msra.mxu1 %v3895_v23  ;;  %v3951_v23 = vcombine.low %v967_v7, %v971_v8  ;;  %v4294_v7 = vld [vmem:[#allocation10] ss:$8 sps:$4 sm:$0xff]   ;;  %v3873_v8 = vcombine.low %v888_v61, %v892_v62 }
 0x2c6   :  { %2588 = vmatpush1.bf16.msra.mxu0 %v3769_v24  ;;  %2548 = vmatprep.subr.bf16.mxu1 %v3904_v25  ;;  %v3825_v24 = vcombine.low %v840_v11, %v844_v12  ;;  %v3960_v25 = vcombine.high %v975_v19, %v979_v20  ;;  %v4299_v12 = vld [vmem:[#allocation10 + $0x14] ss:$8 sps:$4 sm:$0xff]  }
 0x2c7   :  { %2589 = vmatprep.subr.bf16.mxu0 %v3778_v26  ;;  %v3834_v26 = vcombine.high %v848_v9, %v852_v22 }
 0x2c9   :  { %2549 = vmatpush1.bf16.msra.mxu1 %v3903_v28  ;;  %v3959_v28 = vcombine.low %v975_v19, %v979_v20  ;;  %v4302_v19 = vld [vmem:[#allocation10 + $0x24] ss:$8 sps:$4 sm:$0xff]  }
 0x2ca   :  { %2590 = vmatpush1.bf16.msra.mxu0 %v3777_v58  ;;  %2550 = vmatprep.subr.bf16.mxu1 %v3912_v29  ;;  %v3833_v58 = vcombine.low %v848_v9, %v852_v22  ;;  %v3968_v29 = vcombine.high %v983_v27, %v987_v17  ;;  %v912_v9 = vld [vmem:[#allocation8 + $0x4d8] sm:$0xff] }
 0x2cb   :  { %2591 = vmatprep.subr.bf16.mxu0 %v3786_v30  ;;  %v3842_v30 = vcombine.high %v856_v18, %v860_v21  ;;  %v916_v22 = vld [vmem:[#allocation8 + $0x4f8] sm:$0xff] }
 0x2cd   :  { %2551 = vmatpush1.bf16.msra.mxu1 %v3911_v37  ;;  %v3967_v37 = vcombine.low %v983_v27, %v987_v17  ;;  %v924_v27 = vld [vmem:[#allocation8 + $0x538] sm:$0xff] }
 0x2ce   :  { %2592 = vmatpush1.bf16.msra.mxu0 %v3785_v38  ;;  %2552 = vmatprep.subr.bf16.mxu1 %v3920_v39  ;;  %v3841_v38 = vcombine.low %v856_v18, %v860_v21  ;;  %v3976_v39 = vcombine.high %v991_v31, %v995_v32  ;;  %v4303_v17 = vld [vmem:[#allocation10 + $0x30] ss:$8 sps:$4 sm:$0xff]   ;;  %v4308_v18 = vld [vmem:[#allocation10 + $0x44] ss:$8 sps:$4 sm:$0xff]  }
 0x2cf   :  { %2593 = vmatprep.subr.bf16.mxu0 %v3794_v40  ;;  %v3850_v40 = vcombine.high %v864_v33, %v868_v35 }
 0x2d1   :  { %2553 = vmatpush1.bf16.msra.mxu1 %v3919_v45  ;;  %v3975_v45 = vcombine.low %v991_v31, %v995_v32  ;;  %v4311_v31 = vld [vmem:[#allocation10 + $0x54] ss:$8 sps:$4 sm:$0xff]  }
 0x2d2   :  { %2594 = vmatpush1.bf16.msra.mxu0 %v3793_v46  ;;  %2554 = vmatprep.subr.bf16.mxu1 %v3928_v47  ;;  %v3849_v46 = vcombine.low %v864_v33, %v868_v35  ;;  %v3984_v47 = vcombine.high %v999_v41, %v1003_v42  ;;  %v936_v33 = vld [vmem:[#allocation8 + $0x598] sm:$0xff] }
 0x2d3   :  { %2595 = vmatprep.subr.bf16.mxu0 %v3802_v48  ;;  %v3858_v48 = vcombine.high %v872_v43, %v876_v44  ;;  %v940_v35 = vld [vmem:[#allocation8 + $0x5b8] sm:$0xff] }
 0x2d5   :  { %2555 = vmatpush1.bf16.msra.mxu1 %v3927_v52  ;;  %v3983_v52 = vcombine.low %v999_v41, %v1003_v42  ;;  %v3922_v41 = vcombine.high %v936_v33, %v940_v35 }
 0x2d6   :  { %2596 = vmatpush1.bf16.msra.mxu0 %v3801_v57  ;;  %2556 = vmatprep.subr.bf16.mxu1 %v3936_v59  ;;  %v3857_v57 = vcombine.low %v872_v43, %v876_v44  ;;  %v3992_v59 = vcombine.high %v1007_v49, %v1011_v50  ;;  %v944_v43 = vld [vmem:[#allocation8 + $0x5d8] sm:$0xff] }
 0x2d7   :  { %2597 = vmatprep.subr.bf16.mxu0 %v3810_v60  ;;  %v3866_v60 = vcombine.high %v880_v55, %v884_v51  ;;  %v948_v44 = vld [vmem:[#allocation8 + $0x5f8] sm:$0xff] }
 0x2d8   :  { %v4317_v49 = vld [vmem:[#allocation10 + $0x74] ss:$8 sps:$4 sm:$0xff]   ;;  %v3930_v50 = vcombine.high %v944_v43, %v948_v44 }
 0x2d9   :  { %2557 = vmatpush1.bf16.msra.mxu1 %v3935_v1  ;;  %v4296_v1 = vld [vmem:[#allocation10 + $0x4] ss:$8 sps:$4 sm:$0xff]   ;;  %v952_v55 = vld [vmem:[#allocation8 + $0x618] sm:$0xff] }
 0x2da   :  { %2598 = vmatpush1.bf16.msra.mxu0 %v3809_v2  ;;  %2558 = vmatprep.subr.bf16.mxu1 %v3944_v5  ;;  %v3874_v2 = vcombine.high %v888_v61, %v892_v62  ;;  %v896_v5 = vld [vmem:[#allocation8 + $0x458] sm:$0xff] }
 0x2db   :  { %2599 = vmatprep.subr.bf16.mxu0 %v3818_v6  ;;  %v900_v6 = vld [vmem:[#allocation8 + $0x478] sm:$0xff] }
 0x2dc   :  { %v3882_v11 = vcombine.high %v896_v5, %v900_v6  ;;  %v956_v51 = vld [vmem:[#allocation8 + $0x638] sm:$0xff] }
 0x2dd   :  { %2559 = vmatpush1.bf16.msra.mxu1 %v3943_v13  ;;  %v904_v13 = vld [vmem:[#allocation8 + $0x498] sm:$0xff] }
 0x2de   :  { %2600 = vmatpush1.bf16.msra.mxu0 %v3817_v14  ;;  %2560 = vmatprep.subr.bf16.mxu1 %v3952_v15  ;;  %v908_v14 = vld [vmem:[#allocation8 + $0x4b8] sm:$0xff] }
 0x2df   :  { %2601 = vmatprep.subr.bf16.mxu0 %v3826_v16  ;;  %v4297_v15 = vld [vmem:[#allocation10 + $0x10] ss:$8 sps:$4 sm:$0xff]   ;;  %v3881_v16 = vcombine.low %v896_v5, %v900_v6  ;;  %v3890_v20 = vcombine.high %v904_v13, %v908_v14 }
 0x2e0   :  { %v960_v61 = vld [vmem:[#allocation8 + $0x658] sm:$0xff] }
 0x2e1   :  { %2561 = vmatpush1.bf16.msra.mxu1 %v3951_v23  ;;  %v4300_v23 = vld [vmem:[#allocation10 + $0x20] ss:$8 sps:$4 sm:$0xff]   ;;  %v964_v62 = vld [vmem:[#allocation8 + $0x678] sm:$0xff] }
 0x2e2   :  { %2602 = vmatpush1.bf16.msra.mxu0 %v3825_v24  ;;  %2562 = vmatprep.subr.bf16.mxu1 %v3960_v25  ;;  %v3889_v24 = vcombine.low %v904_v13, %v908_v14  ;;  %v4305_v25 = vld [vmem:[#allocation10 + $0x34] ss:$8 sps:$4 sm:$0xff]  }
 0x2e3   :  { %2603 = vmatprep.subr.bf16.mxu0 %v3834_v26  ;;  %v920_v26 = vld [vmem:[#allocation8 + $0x518] sm:$0xff] }
 0x2e4   :  { %v3906_v21 = vcombine.high %v920_v26, %v924_v27  ;;  %v968_v5 = vld [vmem:[#allocation8 + $0x698] sm:$0xff] }
 0x2e5   :  { %2563 = vmatpush1.bf16.msra.mxu1 %v3959_v28  ;;  %v928_v28 = vld [vmem:[#allocation8 + $0x558] sm:$0xff] }
 0x2e6   :  { %2604 = vmatpush1.bf16.msra.mxu0 %v3833_v58  ;;  %2564 = vmatprep.subr.bf16.mxu1 %v3968_v29  ;;  %v932_v58 = vld [vmem:[#allocation8 + $0x578] sm:$0xff]  ;;  %v4306_v29 = vld [vmem:[#allocation10 + $0x40] ss:$8 sps:$4 sm:$0xff]  }
 0x2e7   :  { %2605 = vmatprep.subr.bf16.mxu0 %v3842_v30  ;;  %v3905_v30 = vcombine.low %v920_v26, %v924_v27  ;;  %v3914_v32 = vcombine.high %v928_v28, %v932_v58  ;;  %v972_v6 = vld [vmem:[#allocation8 + $0x6b8] sm:$0xff] }
 0x2e8   :  { %v976_v13 = vld [vmem:[#allocation8 + $0x6d8] sm:$0xff] }
 0x2e9   :  { %2565 = vmatpush1.bf16.msra.mxu1 %v3967_v37  ;;  %v4309_v37 = vld [vmem:[#allocation10 + $0x50] ss:$8 sps:$4 sm:$0xff]  }
 0x2ea   :  { %2606 = vmatpush1.bf16.msra.mxu0 %v3841_v38  ;;  %2566 = vmatprep.subr.bf16.mxu1 %v3976_v39  ;;  %v3913_v38 = vcombine.low %v928_v28, %v932_v58  ;;  %v4314_v39 = vld [vmem:[#allocation10 + $0x64] ss:$8 sps:$4 sm:$0xff]   ;;  %v980_v14 = vld [vmem:[#allocation8 + $0x6f8] sm:$0xff] }
 0x2eb   :  { %2607 = vmatprep.subr.bf16.mxu0 %v3850_v40  ;;  %v992_v26 = vld [vmem:[#allocation8 + $0x758] sm:$0xff] }
 0x2ec   :  { %v996_v27 = vld [vmem:[#allocation8 + $0x778] sm:$0xff] }
 0x2ed   :  { %2567 = vmatpush1.bf16.msra.mxu1 %v3975_v45  ;;  %v1000_v28 = vld [vmem:[#allocation8 + $0x798] sm:$0xff] }
 0x2ee   :  { %2608 = vmatpush1.bf16.msra.mxu0 %v3849_v46  ;;  %2568 = vmatprep.subr.bf16.mxu1 %v3984_v47  ;;  %v4312_v46 = vld [vmem:[#allocation10 + $0x60] ss:$8 sps:$4 sm:$0xff]   ;;  %v1004_v58 = vld [vmem:[#allocation8 + $0x7b8] sm:$0xff] }
 0x2ef   :  { %2609 = vmatprep.subr.bf16.mxu0 %v3858_v48  ;;  %v3921_v48 = vcombine.low %v936_v33, %v940_v35  ;;  %v1008_v33 = vld [vmem:[#allocation8 + $0x7d8] sm:$0xff] }
 0x2f0   :  { %v1012_v35 = vld [vmem:[#allocation8 + $0x7f8] sm:$0xff] }
 0x2f1   :  { %2569 = vmatpush1.bf16.msra.mxu1 %v3983_v52  ;;  %v4315_v52 = vld [vmem:[#allocation10 + $0x70] ss:$8 sps:$4 sm:$0xff]  }
 0x2f2   :  { %2610 = vmatpush1.bf16.msra.mxu0 %v3857_v57  ;;  %2570 = vmatprep.subr.bf16.mxu1 %v3992_v59  ;;  %v3929_v57 = vcombine.low %v944_v43, %v948_v44  ;;  %v4320_v59 = vld [vmem:[#allocation10 + $0x84] ss:$8 sps:$4 sm:$0xff]   ;;  %v4339_v43 = vld [vmem:[#allocation10 + $0xf0] ss:$8 sps:$4 sm:$0xff]   ;;  %v3993_v44 = vcombine.low %v1008_v33, %v1012_v35 }
 0x2f3   :  { %2611 = vmatprep.subr.bf16.mxu0 %v3866_v60  ;;  %v3938_v60 = vcombine.high %v952_v55, %v956_v51 }
 0x2f5   :  { %2571 = vmatpush1.bf16.msra.mxu1 %v3991_v63  ;;  %v4318_v63 = vld [vmem:[#allocation10 + $0x80] ss:$8 sps:$4 sm:$0xff]  }
 0x2f6   :  { %2612 = vmatpush1.bf16.msra.mxu0 %v3865_v0  ;;  %3467 = vmatprep.subr.bf16.mxu1 %v4296_v1  ;;  %v3937_v0 = vcombine.low %v952_v55, %v956_v51  ;;  %v4323_v1 = vld [vmem:[#allocation10 + $0x94] ss:$8 sps:$4 sm:$0xff]  }
 0x2f7   :  { %2622 = vmatprep.subr.bf16.mxu0 %v3874_v2  ;;  %v3946_v2 = vcombine.high %v960_v61, %v964_v62 }
 0x2f8   :  { %2573 = vmatmul.mubr.bf16.vlgmr.msra.gmra.mrb[4].mxu1 %v4828_v36 }
 0x2f9   :  { %2614 = vmatmul.mubr.bf16.vlgmr.msra.gmra.mrb[20].mxu0 %v4810_v10  ;;  %3468 = vmatpush1.bf16.msra.mxu1 %v4294_v7  ;;  %v3898_v10 = vcombine.high %v912_v9, %v916_v22  ;;  %v4321_v7 = vld [vmem:[#allocation10 + $0x90] ss:$8 sps:$4 sm:$0xff]  }
 0x2fa   :  { %2623 = vmatpush1.bf16.msra.mxu0 %v3873_v8  ;;  %2654 = vmatprep.mubr.bf16.mxu0 %v4826_v34  ;;  %v3897_v34 = vcombine.low %v912_v9, %v916_v22  ;;  %v3945_v8 = vcombine.low %v960_v61, %v964_v62  ;;  %v984_v9 = vld [vmem:[#allocation8 + $0x718] sm:$0xff] }
 0x2fb   :  { %2624 = vmatprep.subr.bf16.mxu0 %v3882_v11  ;;  %3469 = vmatprep.subr.bf16.mxu1 %v4299_v12  ;;  %v4326_v11 = vld [vmem:[#allocation10 + $0xa4] ss:$8 sps:$4 sm:$0xff]   ;;  %v3954_v12 = vcombine.high %v968_v5, %v972_v6  ;;  %v988_v22 = vld [vmem:[#allocation8 + $0x738] sm:$0xff] }
 0x2fd   :  { %3470 = vmatpush1.bf16.msra.mxu1 %v4297_v15  ;;  %v4324_v15 = vld [vmem:[#allocation10 + $0xa0] ss:$8 sps:$4 sm:$0xff]  }
 0x2fe   :  { %2625 = vmatpush1.bf16.msra.mxu0 %v3881_v16  ;;  %3471 = vmatprep.subr.bf16.mxu1 %v4302_v19  ;;  %v3953_v16 = vcombine.low %v968_v5, %v972_v6  ;;  %v4329_v19 = vld [vmem:[#allocation10 + $0xb4] ss:$8 sps:$4 sm:$0xff]   ;;  %v4348_v6 = vld [vmem:[#allocation10 + $0x120] ss:$8 sps:$4 sm:$0xff]  }
 0x2ff   :  { %2626 = vmatprep.subr.bf16.mxu0 %v3890_v20  ;;  %v3962_v20 = vcombine.high %v976_v13, %v980_v14  ;;  %v4347_v5 = vld [vmem:[#allocation10 + $0x114] ss:$8 sps:$4 sm:$0xff]  }
 0x301   :  { %3472 = vmatpush1.bf16.msra.mxu1 %v4300_v23  ;;  %v4327_v23 = vld [vmem:[#allocation10 + $0xb0] ss:$8 sps:$4 sm:$0xff]  }
 0x302   :  { %2627 = vmatpush1.bf16.msra.mxu0 %v3889_v24  ;;  %3473 = vmatprep.subr.bf16.mxu1 %v4305_v25  ;;  %v3961_v24 = vcombine.low %v976_v13, %v980_v14  ;;  %v4332_v25 = vld [vmem:[#allocation10 + $0xc4] ss:$8 sps:$4 sm:$0xff]   ;;  %v4359_v13 = vld [vmem:[#allocation10 + $0x154] ss:$8 sps:$4 sm:$0xff]   ;;  %v4357_v14 = vld [vmem:[#allocation10 + $0x150] ss:$8 sps:$4 sm:$0xff]  }
 0x303   :  { %2628 = vmatprep.subr.bf16.mxu0 %v3898_v10  ;;  %v3970_v10 = vcombine.high %v984_v9, %v988_v22 }
 0x305   :  { %3474 = vmatpush1.bf16.msra.mxu1 %v4303_v17  ;;  %v4330_v17 = vld [vmem:[#allocation10 + $0xc0] ss:$8 sps:$4 sm:$0xff]  }
 0x306   :  { %2629 = vmatpush1.bf16.msra.mxu0 %v3897_v34  ;;  %3475 = vmatprep.subr.bf16.mxu1 %v4308_v18  ;;  %v3969_v34 = vcombine.low %v984_v9, %v988_v22  ;;  %v4335_v18 = vld [vmem:[#allocation10 + $0xd4] ss:$8 sps:$4 sm:$0xff]   ;;  %v4368_v9 = vld [vmem:[#allocation10 + $0x184] ss:$8 sps:$4 sm:$0xff]   ;;  %v4366_v22 = vld [vmem:[#allocation10 + $0x180] ss:$8 sps:$4 sm:$0xff]  }
 0x307   :  { %2630 = vmatprep.subr.bf16.mxu0 %v3906_v21  ;;  %v3978_v21 = vcombine.high %v992_v26, %v996_v27 }
 0x309   :  { %3476 = vmatpush1.bf16.msra.mxu1 %v4306_v29  ;;  %v4333_v29 = vld [vmem:[#allocation10 + $0xd0] ss:$8 sps:$4 sm:$0xff]  }
 0x30a   :  { %2631 = vmatpush1.bf16.msra.mxu0 %v3905_v30  ;;  %3477 = vmatprep.subr.bf16.mxu1 %v4311_v31  ;;  %v3977_v30 = vcombine.low %v992_v26, %v996_v27  ;;  %v4338_v31 = vld [vmem:[#allocation10 + $0xe4] ss:$8 sps:$4 sm:$0xff]   ;;  %v4377_v26 = vld [vmem:[#allocation10 + $0x1b4] ss:$8 sps:$4 sm:$0xff]   ;;  %v4375_v27 = vld [vmem:[#allocation10 + $0x1b0] ss:$8 sps:$4 sm:$0xff]  }
 0x30b   :  { %v4845_v40 = vpop.f32.mrb[12].mxu0  ;;  %2632 = vmatprep.subr.bf16.mxu0 %v3914_v32  ;;  %v3986_v32 = vcombine.high %v1000_v28, %v1004_v58 }
 0x30c   :  { %v4847_v42 = vpop.f32.mrb[13].mxu0 }
 0x30d   :  { %v2373_v45 = vpop.f32.mrb[14].mxu0  ;;  %3478 = vmatpush1.bf16.msra.mxu1 %v4309_v37  ;;  %v4336_v37 = vld [vmem:[#allocation10 + $0xe0] ss:$8 sps:$4 sm:$0xff]  }
 0x30e   :  { %2633 = vmatpush1.bf16.msra.mxu0 %v3913_v38  ;;  %v2374_v47 = vpop.f32.mrb[15].mxu0  ;;  %3479 = vmatprep.subr.bf16.mxu1 %v4314_v39  ;;  %v3985_v38 = vcombine.low %v1000_v28, %v1004_v58  ;;  %v4341_v39 = vld [vmem:[#allocation10 + $0xf4] ss:$8 sps:$4 sm:$0xff]   ;;  %v4344_v45 = vld [vmem:[#allocation10 + $0x104] ss:$8 sps:$4 sm:$0xff]  }
 0x30f   :  { %2634 = vmatprep.subr.bf16.mxu0 %v3922_v41  ;;  %v3994_v41 = vcombine.high %v1008_v33, %v1012_v35  ;;  %v4386_v58 = vld [vmem:[#allocation10 + $0x1e4] ss:$8 sps:$4 sm:$0xff]   ;;  %v4389_v35 = vld [vmem:[#allocation10 + $0x1f4] ss:$8 sps:$4 sm:$0xff]  }
 0x311   :  { %3480 = vmatpush1.bf16.msra.mxu1 %v4312_v46  ;;  %v4853_v46 = vld [vmem:[%s4898_s6] sm:$0xff] }
 0x312   :  { %2635 = vmatpush1.bf16.msra.mxu0 %v3921_v48  ;;  %3481 = vmatprep.subr.bf16.mxu1 %v4317_v49  ;;  %v1018_v47 = vrot.slane %v4853_v46, %v4769_v54  ;;  %v1022_v48 = vrot.slane %v4853_v46, %v4775_v56  ;;  %v1026_v28 = vrot.slane %v4853_v46, %v333_v3 }
 0x313   :  { %2636 = vmatprep.subr.bf16.mxu0 %v3930_v50 }
 0x314   :  { %v2370_v49 = vadd.f32 %v4845_v40, %v1018_v47  ;;  %v2372_v50 = vadd.f32 %v4847_v42, %v1022_v48  ;;  %v4345_v40 = vld [vmem:[#allocation10 + $0x110] ss:$8 sps:$4 sm:$0xff]   ;;  %v4350_v42 = vld [vmem:[#allocation10 + $0x124] ss:$8 sps:$4 sm:$0xff]  }
 0x315   :  { %3482 = vmatpush1.bf16.msra.mxu1 %v4315_v52 }
 0x316   :  { %2637 = vmatpush1.bf16.msra.mxu0 %v3929_v57  ;;  %3483 = vmatprep.subr.bf16.mxu1 %v4320_v59 }
 0x317   :  { %2638 = vmatprep.subr.bf16.mxu0 %v3938_v60 }
 0x319   :  { %3484 = vmatpush1.bf16.msra.mxu1 %v4318_v63 }
 0x31a   :  { %2639 = vmatpush1.bf16.msra.mxu0 %v3937_v0  ;;  %3485 = vmatprep.subr.bf16.mxu1 %v4323_v1  ;;  %v4342_v1 = vld [vmem:[#allocation10 + $0x100] ss:$8 sps:$4 sm:$0xff]  }
 0x31b   :  { %2640 = vmatprep.subr.bf16.mxu0 %v3946_v2 }
 0x31d   :  { %3486 = vmatpush1.bf16.msra.mxu1 %v4321_v7  ;;  %v4353_v7 = vld [vmem:[#allocation10 + $0x134] ss:$8 sps:$4 sm:$0xff]  }
 0x31e   :  { %2641 = vmatpush1.bf16.msra.mxu0 %v3945_v8  ;;  %3487 = vmatprep.subr.bf16.mxu1 %v4326_v11  ;;  %v4351_v8 = vld [vmem:[#allocation10 + $0x130] ss:$8 sps:$4 sm:$0xff]   ;;  %v4356_v11 = vld [vmem:[#allocation10 + $0x144] ss:$8 sps:$4 sm:$0xff]  }
 0x31f   :  { %2642 = vmatprep.subr.bf16.mxu0 %v3954_v12  ;;  %v4354_v12 = vld [vmem:[#allocation10 + $0x140] ss:$8 sps:$4 sm:$0xff]  }
 0x321   :  { %3488 = vmatpush1.bf16.msra.mxu1 %v4324_v15  ;;  %v4362_v15 = vld [vmem:[#allocation10 + $0x164] ss:$8 sps:$4 sm:$0xff]  }
 0x322   :  { %2643 = vmatpush1.bf16.msra.mxu0 %v3953_v16  ;;  %3489 = vmatprep.subr.bf16.mxu1 %v4329_v19  ;;  %v4360_v16 = vld [vmem:[#allocation10 + $0x160] ss:$8 sps:$4 sm:$0xff]   ;;  %v4365_v19 = vld [vmem:[#allocation10 + $0x174] ss:$8 sps:$4 sm:$0xff]  }
 0x323   :  { %2644 = vmatprep.subr.bf16.mxu0 %v3962_v20  ;;  %v4363_v20 = vld [vmem:[#allocation10 + $0x170] ss:$8 sps:$4 sm:$0xff]  }
 0x325   :  { %3490 = vmatpush1.bf16.msra.mxu1 %v4327_v23  ;;  %v4371_v23 = vld [vmem:[#allocation10 + $0x194] ss:$8 sps:$4 sm:$0xff]  }
 0x326   :  { %2645 = vmatpush1.bf16.msra.mxu0 %v3961_v24  ;;  %3491 = vmatprep.subr.bf16.mxu1 %v4332_v25  ;;  %v4369_v24 = vld [vmem:[#allocation10 + $0x190] ss:$8 sps:$4 sm:$0xff]   ;;  %v4374_v25 = vld [vmem:[#allocation10 + $0x1a4] ss:$8 sps:$4 sm:$0xff]  }
 0x327   :  { %2646 = vmatprep.subr.bf16.mxu0 %v3970_v10  ;;  %v4372_v10 = vld [vmem:[#allocation10 + $0x1a0] ss:$8 sps:$4 sm:$0xff]  }
 0x329   :  { %3492 = vmatpush1.bf16.msra.mxu1 %v4330_v17  ;;  %v4380_v17 = vld [vmem:[#allocation10 + $0x1c4] ss:$8 sps:$4 sm:$0xff]  }
 0x32a   :  { %2647 = vmatpush1.bf16.msra.mxu0 %v3969_v34  ;;  %3493 = vmatprep.subr.bf16.mxu1 %v4335_v18  ;;  %v4378_v34 = vld [vmem:[#allocation10 + $0x1c0] ss:$8 sps:$4 sm:$0xff]   ;;  %v4383_v18 = vld [vmem:[#allocation10 + $0x1d4] ss:$8 sps:$4 sm:$0xff]  }
 0x32b   :  { %2648 = vmatprep.subr.bf16.mxu0 %v3978_v21  ;;  %v4381_v21 = vld [vmem:[#allocation10 + $0x1d0] ss:$8 sps:$4 sm:$0xff]  }
 0x32d   :  { %3494 = vmatpush1.bf16.msra.mxu1 %v4333_v29  ;;  %v1030_v29 = vrot.slane %v4853_v46, %v337_v4  ;;  %v4390_v4 = vld [vmem:[#allocation10 + $0x200] ss:$8 sps:$4 sm:$0xff]  }
 0x32e   :  { %2649 = vmatpush1.bf16.msra.mxu0 %v3977_v30  ;;  %3495 = vmatprep.subr.bf16.mxu1 %v4338_v31  ;;  %v4384_v31 = vld [vmem:[#allocation10 + $0x1e0] ss:$8 sps:$4 sm:$0xff]  }
 0x32f   :  { %2650 = vmatprep.subr.bf16.mxu0 %v3986_v32 }
 0x331   :  { %3496 = vmatpush1.bf16.msra.mxu1 %v4336_v37 }
 0x332   :  { %2651 = vmatpush1.bf16.msra.mxu0 %v3985_v38  ;;  %3497 = vmatprep.subr.bf16.mxu1 %v4341_v39 }
 0x333   :  { %2652 = vmatprep.subr.bf16.mxu0 %v3994_v41 }
 0x335   :  { %3498 = vmatpush1.bf16.msra.mxu1 %v4339_v43 }
 0x336   :  { %2653 = vmatpush1.bf16.msra.mxu0 %v3993_v44  ;;  %3508 = vmatprep.subr.bf16.mxu1 %v4344_v45  ;;  %v4387_v44 = vld [vmem:[#allocation10 + $0x1f0] ss:$8 sps:$4 sm:$0xff]   ;;  %v4392_v45 = vld [vmem:[#allocation10 + $0x204] ss:$8 sps:$4 sm:$0xff]  }
 0x339   :  { %2655 = vmatmul.mubr.bf16.vlgmr.msra.gmra.mrb[20].mxu0 %v4828_v36 }
 0x34b   :  { %v2410_v55 = vpop.f32.mrb[0].mxu1 }
 0x34c   :  { %v2411_v51 = vadd.f32 %v2410_v55, %v2370_v49  ;;  %v2412_v52 = vpop.f32.mrb[1].mxu1  ;;  %v4393_v55 = vld [vmem:[#allocation10 + $0x210] ss:$8 sps:$4 sm:$0xff]  }
 0x34d   :  { %v2413_v57 = vadd.f32 %v2412_v52, %v2372_v50  ;;  %v2414_v36 = vpop.f32.mrb[2].mxu1  ;;  %v4395_v50 = vld [vmem:[#allocation10 + $0x214] ss:$8 sps:$4 sm:$0xff]   ;;  %v4396_v52 = vld [vmem:[#allocation10 + $0x220] ss:$8 sps:$4 sm:$0xff]  }
 0x34e   :  { %v2663_v59 = vmul.f32 0.2, %v2411_v51  ;;  %v2415_v60 = vpop.f32.mrb[3].mxu1  ;;  %v4399_v36 = vld [vmem:[#allocation10 + $0x230] ss:$8 sps:$4 sm:$0xff]  }
 0x34f   :  { %v2664_v61 = vmul.f32 0.2, %v2413_v57  ;;  %v4402_v60 = vld [vmem:[#allocation10 + $0x240] ss:$8 sps:$4 sm:$0xff]  }
 0x350   :  { %v2671_v62 = vmax.f32 %v2411_v51, %v2663_v59  ;;  %v4398_v51 = vld [vmem:[#allocation10 + $0x224] ss:$8 sps:$4 sm:$0xff]  }
 0x351   :  { %v2672_v63 = vmax.f32 %v2413_v57, %v2664_v61  ;;  %v4401_v57 = vld [vmem:[#allocation10 + $0x234] ss:$8 sps:$4 sm:$0xff]   ;;  %v4404_v59 = vld [vmem:[#allocation10 + $0x244] ss:$8 sps:$4 sm:$0xff]  }
 0x352   :  { %v2679_v2 = vpack.c.bf16 %v2671_v62, %v2671_v62  ;;  %v4407_v61 = vld [vmem:[#allocation10 + $0x254] ss:$8 sps:$4 sm:$0xff]   ;;  %v4405_v62 = vld [vmem:[#allocation10 + $0x250] ss:$8 sps:$4 sm:$0xff]  }
 0x353   :  { %v2680_v0 = vpack.c.bf16 %v2672_v63, %v2672_v63  ;;  %v4410_v63 = vld [vmem:[#allocation10 + $0x264] ss:$8 sps:$4 sm:$0xff]  }
 0x355   :  { %3499 = vmatprep.mubr.bf16.mxu1 %v2680_v0  ;;  %v4408_v0 = vld [vmem:[#allocation10 + $0x260] ss:$8 sps:$4 sm:$0xff]  }
 0x356   :  { %3500 = vmatmul.mubr.bf16.vlgmr.msra.gmra.mrb[8].mxu1 %v2679_v2  ;;  %v4411_v2 = vld [vmem:[#allocation10 + $0x270] ss:$8 sps:$4 sm:$0xff]  }
 0x357   :  { %3509 = vmatpush1.bf16.msra.mxu1 %v4342_v1  ;;  %v4413_v1 = vld [vmem:[#allocation10 + $0x274] ss:$8 sps:$4 sm:$0xff]  }
 0x358   :  { %3510 = vmatprep.subr.bf16.mxu1 %v4347_v5  ;;  %v4416_v5 = vld [vmem:[#allocation10 + $0x284] ss:$8 sps:$4 sm:$0xff]  }
 0x35b   :  { %3511 = vmatpush1.bf16.msra.mxu1 %v4345_v40  ;;  %v4414_v40 = vld [vmem:[#allocation10 + $0x280] ss:$8 sps:$4 sm:$0xff]  }
 0x35c   :  { %3512 = vmatprep.subr.bf16.mxu1 %v4350_v42  ;;  %v4419_v42 = vld [vmem:[#allocation10 + $0x294] ss:$8 sps:$4 sm:$0xff]  }
 0x35f   :  { %3513 = vmatpush1.bf16.msra.mxu1 %v4348_v6  ;;  %v4417_v6 = vld [vmem:[#allocation10 + $0x290] ss:$8 sps:$4 sm:$0xff]  }
 0x360   :  { %3514 = vmatprep.subr.bf16.mxu1 %v4353_v7  ;;  %v4422_v7 = vld [vmem:[#allocation10 + $0x2a4] ss:$8 sps:$4 sm:$0xff]  }
 0x363   :  { %3515 = vmatpush1.bf16.msra.mxu1 %v4351_v8  ;;  %v4420_v8 = vld [vmem:[#allocation10 + $0x2a0] ss:$8 sps:$4 sm:$0xff]  }
 0x364   :  { %3516 = vmatprep.subr.bf16.mxu1 %v4356_v11  ;;  %v4425_v11 = vld [vmem:[#allocation10 + $0x2b4] ss:$8 sps:$4 sm:$0xff]  }
 0x367   :  { %3517 = vmatpush1.bf16.msra.mxu1 %v4354_v12  ;;  %v4423_v12 = vld [vmem:[#allocation10 + $0x2b0] ss:$8 sps:$4 sm:$0xff]  }
 0x368   :  { %3518 = vmatprep.subr.bf16.mxu1 %v4359_v13  ;;  %v4428_v13 = vld [vmem:[#allocation10 + $0x2c4] ss:$8 sps:$4 sm:$0xff]  }
 0x36b   :  { %3519 = vmatpush1.bf16.msra.mxu1 %v4357_v14  ;;  %v4426_v14 = vld [vmem:[#allocation10 + $0x2c0] ss:$8 sps:$4 sm:$0xff]  }
 0x36c   :  { %3520 = vmatprep.subr.bf16.mxu1 %v4362_v15  ;;  %v4431_v15 = vld [vmem:[#allocation10 + $0x2d4] ss:$8 sps:$4 sm:$0xff]  }
 0x36f   :  { %3521 = vmatpush1.bf16.msra.mxu1 %v4360_v16  ;;  %v1033_v16 = vsub.s32 4, %v4766_v53 }
 0x370   :  { %3522 = vmatprep.subr.bf16.mxu1 %v4365_v19  ;;  %v1037_v19 = vsub.s32 5, %v4766_v53 }
 0x373   :  { %3523 = vmatpush1.bf16.msra.mxu1 %v4363_v20  ;;  %v4429_v20 = vld [vmem:[#allocation10 + $0x2d0] ss:$8 sps:$4 sm:$0xff]  }
 0x374   :  { %3524 = vmatprep.subr.bf16.mxu1 %v4368_v9  ;;  %v1034_v9 = vrot.slane %v4853_v46, %v1033_v16 }
 0x377   :  { %3525 = vmatpush1.bf16.msra.mxu1 %v4366_v22  ;;  %v4434_v22 = vld [vmem:[#allocation10 + $0x2e4] ss:$8 sps:$4 sm:$0xff]  }
 0x378   :  { %3526 = vmatprep.subr.bf16.mxu1 %v4371_v23  ;;  %v1038_v23 = vrot.slane %v4853_v46, %v1037_v19 }
 0x37b   :  { %3527 = vmatpush1.bf16.msra.mxu1 %v4369_v24 }
 0x37c   :  { %3528 = vmatprep.subr.bf16.mxu1 %v4374_v25  ;;  %v4432_v25 = vld [vmem:[#allocation10 + $0x2e0] ss:$8 sps:$4 sm:$0xff]  }
 0x37f   :  { %3529 = vmatpush1.bf16.msra.mxu1 %v4372_v10 }
 0x380   :  { %3530 = vmatprep.subr.bf16.mxu1 %v4377_v26 }
 0x383   :  { %3531 = vmatpush1.bf16.msra.mxu1 %v4375_v27  ;;  %v4437_v27 = vld [vmem:[#allocation10 + $0x2f4] ss:$8 sps:$4 sm:$0xff]  }
 0x384   :  { %3532 = vmatprep.subr.bf16.mxu1 %v4380_v17 }
 0x387   :  { %3533 = vmatpush1.bf16.msra.mxu1 %v4378_v34 }
 0x388   :  { %3534 = vmatprep.subr.bf16.mxu1 %v4383_v18 }
 0x38b   :  { %3535 = vmatpush1.bf16.msra.mxu1 %v4381_v21  ;;  %v2492_v30 = vpop.f32.mrb[16].mxu0 }
 0x38c   :  { %v4129_v32 = vadd.f32 %v2492_v30, %v1026_v28  ;;  %v2494_v33 = vpop.f32.mrb[17].mxu0  ;;  %3536 = vmatprep.subr.bf16.mxu1 %v4386_v58  ;;  %v4435_v58 = vld [vmem:[#allocation10 + $0x2f0] ss:$8 sps:$4 sm:$0xff]   ;;  %v4440_v30 = vld [vmem:[#allocation10 + $0x304] ss:$8 sps:$4 sm:$0xff]  }
 0x38d   :  { %v4130_v37 = vadd.f32 %v2494_v33, %v1030_v29  ;;  %v2496_v38 = vpop.f32.mrb[18].mxu0  ;;  %v4438_v33 = vld [vmem:[#allocation10 + $0x300] ss:$8 sps:$4 sm:$0xff]  }
 0x38e   :  { %v2665_v39 = vmul.f32 0.2, %v4129_v32  ;;  %v2497_v41 = vpop.f32.mrb[19].mxu0  ;;  %v4441_v38 = vld [vmem:[#allocation10 + $0x310] ss:$8 sps:$4 sm:$0xff]  }
 0x38f   :  { %v2666_v43 = vmul.f32 0.2, %v4130_v37  ;;  %3537 = vmatpush1.bf16.msra.mxu1 %v4384_v31  ;;  %v4444_v41 = vld [vmem:[#allocation10 + $0x320] ss:$8 sps:$4 sm:$0xff]  }
 0x390   :  { %v2673_v3 = vmax.f32 %v4129_v32, %v2665_v39  ;;  %3538 = vmatprep.subr.bf16.mxu1 %v4389_v35  ;;  %v4446_v39 = vld [vmem:[#allocation10 + $0x324] ss:$8 sps:$4 sm:$0xff]  }
 0x391   :  { %v2674_v47 = vmax.f32 %v4130_v37, %v2666_v43  ;;  %v4443_v37 = vld [vmem:[#allocation10 + $0x314] ss:$8 sps:$4 sm:$0xff]  }
 0x392   :  { %v2681_v49 = vpack.c.bf16 %v2673_v3, %v2673_v3  ;;  %v4449_v43 = vld [vmem:[#allocation10 + $0x334] ss:$8 sps:$4 sm:$0xff]   ;;  %v4452_v3 = vld [vmem:[#allocation10 + $0x344] ss:$8 sps:$4 sm:$0xff]  }
 0x393   :  { %v2682_v48 = vpack.c.bf16 %v2674_v47, %v2674_v47  ;;  %3539 = vmatpush1.bf16.msra.mxu1 %v4387_v44  ;;  %v4447_v44 = vld [vmem:[#allocation10 + $0x330] ss:$8 sps:$4 sm:$0xff]   ;;  %v4455_v47 = vld [vmem:[#allocation10 + $0x354] ss:$8 sps:$4 sm:$0xff]  }
 0x394   :  { %3549 = vmatprep.subr.bf16.mxu1 %v4392_v45  ;;  %v4450_v45 = vld [vmem:[#allocation10 + $0x340] ss:$8 sps:$4 sm:$0xff]  }
 0x395   :  { %3540 = vmatprep.mubr.bf16.mxu1 %v2682_v48  ;;  %v4453_v48 = vld [vmem:[#allocation10 + $0x350] ss:$8 sps:$4 sm:$0xff]  }
 0x396   :  { %3541 = vmatmul.mubr.bf16.vlgmr.msra.gmra.mrb[8].mxu1 %v2681_v49  ;;  %v4456_v49 = vld [vmem:[#allocation10 + $0x360] ss:$8 sps:$4 sm:$0xff]  }
 0x397   :  { %3550 = vmatpush1.bf16.msra.mxu1 %v4390_v4  ;;  %v4458_v4 = vld [vmem:[#allocation10 + $0x364] ss:$8 sps:$4 sm:$0xff]  }
 0x398   :  { %3551 = vmatprep.subr.bf16.mxu1 %v4395_v50  ;;  %v4461_v50 = vld [vmem:[#allocation10 + $0x374] ss:$8 sps:$4 sm:$0xff]  }
 0x39b   :  { %3552 = vmatpush1.bf16.msra.mxu1 %v4393_v55  ;;  %v4459_v55 = vld [vmem:[#allocation10 + $0x370] ss:$8 sps:$4 sm:$0xff]  }
 0x39c   :  { %3553 = vmatprep.subr.bf16.mxu1 %v4398_v51  ;;  %v4464_v51 = vld [vmem:[#allocation10 + $0x384] ss:$8 sps:$4 sm:$0xff]  }
 0x39f   :  { %3554 = vmatpush1.bf16.msra.mxu1 %v4396_v52  ;;  %v4462_v52 = vld [vmem:[#allocation10 + $0x380] ss:$8 sps:$4 sm:$0xff]  }
 0x3a0   :  { %3555 = vmatprep.subr.bf16.mxu1 %v4401_v57  ;;  %v4467_v57 = vld [vmem:[#allocation10 + $0x394] ss:$8 sps:$4 sm:$0xff]  }
 0x3a3   :  { %3556 = vmatpush1.bf16.msra.mxu1 %v4399_v36  ;;  %v4465_v36 = vld [vmem:[#allocation10 + $0x390] ss:$8 sps:$4 sm:$0xff]  }
 0x3a4   :  { %3557 = vmatprep.subr.bf16.mxu1 %v4404_v59  ;;  %v4470_v59 = vld [vmem:[#allocation10 + $0x3a4] ss:$8 sps:$4 sm:$0xff]  }
 0x3a7   :  { %3558 = vmatpush1.bf16.msra.mxu1 %v4402_v60  ;;  %v4468_v60 = vld [vmem:[#allocation10 + $0x3a0] ss:$8 sps:$4 sm:$0xff]  }
 0x3a8   :  { %3559 = vmatprep.subr.bf16.mxu1 %v4407_v61  ;;  %v4473_v61 = vld [vmem:[#allocation10 + $0x3b4] ss:$8 sps:$4 sm:$0xff]  }
 0x3ab   :  { %3560 = vmatpush1.bf16.msra.mxu1 %v4405_v62  ;;  %v4471_v62 = vld [vmem:[#allocation10 + $0x3b0] ss:$8 sps:$4 sm:$0xff]  }
 0x3ac   :  { %3561 = vmatprep.subr.bf16.mxu1 %v4410_v63  ;;  %v4476_v63 = vld [vmem:[#allocation10 + $0x3c4] ss:$8 sps:$4 sm:$0xff]  }
 0x3af   :  { %3562 = vmatpush1.bf16.msra.mxu1 %v4408_v0  ;;  %v4474_v0 = vld [vmem:[#allocation10 + $0x3c0] ss:$8 sps:$4 sm:$0xff]  }
 0x3b0   :  { %3563 = vmatprep.subr.bf16.mxu1 %v4413_v1  ;;  %v4479_v1 = vld [vmem:[#allocation10 + $0x3d4] ss:$8 sps:$4 sm:$0xff]  }
 0x3b3   :  { %3564 = vmatpush1.bf16.msra.mxu1 %v4411_v2  ;;  %v1041_v2 = vsub.s32 6, %v4766_v53 }
 0x3b4   :  { %3565 = vmatprep.subr.bf16.mxu1 %v4416_v5  ;;  %v1045_v5 = vsub.s32 7, %v4766_v53  ;;  %v4483_v53 = vld [vmem:[#allocation10 + $0x3f0] ss:$8 sps:$4 sm:$0xff]  }
 0x3b7   :  { %3566 = vmatpush1.bf16.msra.mxu1 %v4414_v40  ;;  %v4477_v40 = vld [vmem:[#allocation10 + $0x3d0] ss:$8 sps:$4 sm:$0xff]  }
 0x3b8   :  { %3567 = vmatprep.subr.bf16.mxu1 %v4419_v42  ;;  %v4482_v42 = vld [vmem:[#allocation10 + $0x3e4] ss:$8 sps:$4 sm:$0xff]  }
 0x3bb   :  { %3568 = vmatpush1.bf16.msra.mxu1 %v4417_v6  ;;  %v1042_v6 = vrot.slane %v4853_v46, %v1041_v2 }
 0x3bc   :  { %3569 = vmatprep.subr.bf16.mxu1 %v4422_v7  ;;  %v1046_v7 = vrot.slane %v4853_v46, %v1045_v5 }
 0x3bf   :  { %3570 = vmatpush1.bf16.msra.mxu1 %v4420_v8  ;;  %v4480_v8 = vld [vmem:[#allocation10 + $0x3e0] ss:$8 sps:$4 sm:$0xff]  }
 0x3c0   :  { %3571 = vmatprep.subr.bf16.mxu1 %v4425_v11 }
 0x3c3   :  { %3572 = vmatpush1.bf16.msra.mxu1 %v4423_v12  ;;  %v4485_v12 = vld [vmem:[#allocation10 + $0x3f4] ss:$8 sps:$4 sm:$0xff]  }
 0x3c4   :  { %3573 = vmatprep.subr.bf16.mxu1 %v4428_v13 }
 0x3c7   :  { %3574 = vmatpush1.bf16.msra.mxu1 %v4426_v14 }
 0x3c8   :  { %3575 = vmatprep.subr.bf16.mxu1 %v4431_v15 }
 0x3cb   :  { %v2574_v24 = vpop.f32.mrb[4].mxu1  ;;  %3576 = vmatpush1.bf16.msra.mxu1 %v4429_v20 }
 0x3cc   :  { %v4131_v10 = vadd.f32 %v2574_v24, %v1034_v9  ;;  %v2576_v26 = vpop.f32.mrb[5].mxu1  ;;  %3577 = vmatprep.subr.bf16.mxu1 %v4434_v22 }
 0x3cd   :  { %v4132_v17 = vadd.f32 %v2576_v26, %v1038_v23  ;;  %v2578_v34 = vpop.f32.mrb[6].mxu1 }
 0x3ce   :  { %v2667_v18 = vmul.f32 0.2, %v4131_v10  ;;  %v2579_v21 = vpop.f32.mrb[7].mxu1 }
 0x3cf   :  { %v2668_v28 = vmul.f32 0.2, %v4132_v17  ;;  %3578 = vmatpush1.bf16.msra.mxu1 %v4432_v25  ;;  %v2815_v25 = vld [vmem:[%s4900_s8] sm:$0x3]  ;;  %s4600_s8 = scalar_lea.vmem %s3649_s10, 128 }
 0x3d0   :  { %v2675_v29 = vmax.f32 %v4131_v10, %v2667_v18  ;;  %3579 = vmatprep.subr.bf16.mxu1 %v4437_v27  ;;  %v2820_v10 = vrot.slane %v2815_v25, %v4769_v54  ;;  %v2824_v26 = vrot.slane %v2815_v25, %v4775_v56  ;;  %p4601_p12 = scmp.ne.s32.totalorder %s3649_s10, %s4600_s8  ;;  %p4606_p0 = scmp.lt.s32.totalorder %s4600_s8, %s4600_s8 }
 0x3d1   :  { %v2676_v31 = vmax.f32 %v4132_v17, %v2668_v28 }
 0x3d2   :  { %v2683_v35 = vpack.c.bf16 %v2675_v29, %v2675_v29  ;;  %p4607_p1 = por %p4606_p0, %p4605_p13 }
 0x3d3   :  { %v2684_v32 = vpack.c.bf16 %v2676_v31, %v2676_v31  ;;  %3580 = vmatpush1.bf16.msra.mxu1 %v4435_v58 }
 0x3d4   :  { %3590 = vmatprep.subr.bf16.mxu1 %v4440_v30  ;;  %p4608_p2 = pnand %p4607_p1, %p4601_p12 }
 0x3d5   :  { %3581 = vmatprep.mubr.bf16.mxu1 %v2684_v32 }
 0x3d6   :  { %3582 = vmatmul.mubr.bf16.vlgmr.msra.gmra.mrb[8].mxu1 %v2683_v35 }
 0x3d7   :  { %3591 = vmatpush1.bf16.msra.mxu1 %v4438_v33 }
 0x3d8   :  { %3592 = vmatprep.subr.bf16.mxu1 %v4443_v37 }
 0x3db   :  { %3593 = vmatpush1.bf16.msra.mxu1 %v4441_v38 }
 0x3dc   :  { %3594 = vmatprep.subr.bf16.mxu1 %v4446_v39 }
 0x3df   :  { %3595 = vmatpush1.bf16.msra.mxu1 %v4444_v41 }
 0x3e0   :  { %3596 = vmatprep.subr.bf16.mxu1 %v4449_v43 }
 0x3e3   :  { %3597 = vmatpush1.bf16.msra.mxu1 %v4447_v44 }
 0x3e4   :  { %3598 = vmatprep.subr.bf16.mxu1 %v4452_v3 }
 0x3e7   :  { %3599 = vmatpush1.bf16.msra.mxu1 %v4450_v45 }
 0x3e8   :  { %3600 = vmatprep.subr.bf16.mxu1 %v4455_v47 }
 0x3eb   :  { %3601 = vmatpush1.bf16.msra.mxu1 %v4453_v48 }
 0x3ec   :  { %3602 = vmatprep.subr.bf16.mxu1 %v4458_v4 }
 0x3ef   :  { %3603 = vmatpush1.bf16.msra.mxu1 %v4456_v49 }
 0x3f0   :  { %3604 = vmatprep.subr.bf16.mxu1 %v4461_v50 }
 0x3f3   :  { %3605 = vmatpush1.bf16.msra.mxu1 %v4459_v55 }
 0x3f4   :  { %3606 = vmatprep.subr.bf16.mxu1 %v4464_v51 }
 0x3f7   :  { %3607 = vmatpush1.bf16.msra.mxu1 %v4462_v52 }
 0x3f8   :  { %3608 = vmatprep.subr.bf16.mxu1 %v4467_v57 }
 0x3fb   :  { %3609 = vmatpush1.bf16.msra.mxu1 %v4465_v36 }
 0x3fc   :  { %3610 = vmatprep.subr.bf16.mxu1 %v4470_v59 }
 0x3ff   :  { %3611 = vmatpush1.bf16.msra.mxu1 %v4468_v60 }
 0x400   :  { %3612 = vmatprep.subr.bf16.mxu1 %v4473_v61 }
 0x403   :  { %3613 = vmatpush1.bf16.msra.mxu1 %v4471_v62 }
 0x404   :  { %3614 = vmatprep.subr.bf16.mxu1 %v4476_v63 }
 0x407   :  { %3615 = vmatpush1.bf16.msra.mxu1 %v4474_v0 }
 0x408   :  { %3616 = vmatprep.subr.bf16.mxu1 %v4479_v1 }
 0x40b   :  { %3617 = vmatpush1.bf16.msra.mxu1 %v4477_v40 }
 0x40c   :  { %v2656_v11 = vpop.f32.mrb[20].mxu0  ;;  %3618 = vmatprep.subr.bf16.mxu1 %v4482_v42 }
 0x40d   :  { %v4133_v13 = vadd.f32 %v2656_v11, %v1042_v6  ;;  %v2658_v14 = vpop.f32.mrb[21].mxu0 }
 0x40e   :  { %v4134_v15 = vadd.f32 %v2658_v14, %v1046_v7  ;;  %v2660_v16 = vpop.f32.mrb[22].mxu0 }
 0x40f   :  { %v2669_v19 = vmul.f32 0.2, %v4133_v13  ;;  %v2661_v20 = vpop.f32.mrb[23].mxu0  ;;  %3619 = vmatpush1.bf16.msra.mxu1 %v4480_v8 }
 0x410   :  { %v2670_v9 = vmul.f32 0.2, %v4134_v15  ;;  %3620 = vmatprep.subr.bf16.mxu1 %v4485_v12 }
 0x411   :  { %v2677_v22 = vmax.f32 %v4133_v13, %v2669_v19 }
 0x412   :  { %v2678_v23 = vmax.f32 %v4134_v15, %v2670_v9 }
 0x413   :  { %3621 = vmatpush1.bf16.msra.mxu1 %v4483_v53  ;;  %v2685_v46 = vpack.c.bf16 %v2677_v22, %v2677_v22 }
 0x414   :  { %v2686_v24 = vpack.c.bf16 %v2678_v23, %v2678_v23 }
 0x416   :  { %3622 = vmatprep.mubr.bf16.mxu1 %v2686_v24 }
 0x417   :  { %3623 = vmatmul.mubr.bf16.vlgmr.msra.gmra.mrb[8].mxu1 %v2685_v46 }
 0x4ea   :  { %v3624_v27 = vpop.f32.mrb[8].mxu1 }
 0x4eb   :  { %v4135_v17 = vadd.f32 %v3624_v27, %v2820_v10  ;;  %v3626_v34 = vpop.f32.mrb[9].mxu1 }
 0x4ec   :  { %v4136_v18 = vadd.f32 %v3626_v34, %v2824_v26  ;;  %v3628_v21 = vpop.f32.mrb[10].mxu1 }
 0x4ed   :  { %4486 = vtanh.f32 %v4135_v17  ;;  %v3629_v28 = vpop.f32.mrb[11].mxu1 }
 0x4ee   :  { %4488 = vtanh.f32 %v4136_v18 }
 0x4f7   :  { %v4487_v58 = vpop.eup %4486 }
 0x4f8   :  { %v4489_v29 = vpop.eup %4488 }
 0x4f9   :  { %v4124_v30 = vpack.c.bf16 %v4489_v29, %v4487_v58 }
 0x4fb   :  { %3641 = vst [vmem:[#allocation11] sm:$0xff] %v4124_v30 }
 0x4fc   :  { %4611 = shalt.err (!%p4608_p2)
}
 0x4fd   :  { %s4612_s15 = scalar_lea.hbm %s4901_s9, 128 }
 0x4fe   :  { %p4613_p3 = scmp.ne.s32.totalorder %s4901_s9, %s4612_s15  ;;  %p4616_p4 = scmp.lt.u32.totalorder %s4612_s15, %s4901_s9 }
 0x500   :  { %p4618_p5 = pnand %p4616_p4, %p4613_p3 }
 0x502   :  { %4621 = shalt.err (!%p4618_p5)
}
 0x503   :  { %3651 = dma.vmem_to_hbm [thread:$0]  %s3649_s10, 128, %s4901_s9, [#allocation4]  }
 0x504   :  { %4628 = dma.done.wait [#allocation4], 128  }
 0x505   :  { %4629 = vsyncadd [#allocation4], 4294967168 }
 0x506   :  { %3655 = vsyncpa [#allocation3], 1 }
 0x507   :  { %3656 = vsyncpa [#allocation6], 1 }
 0x508   :  { %3657 = vsyncpa [#allocation9], 1 }
 0x509   :  { %3658 = vsyncpa [#allocation4], 1 }

</bundles_post_ra>
